<compile_context>
chip_gen: v7x
topology: tpu7x:2x2x1
jax: 0.10.0
libtpu: 0.0.40
codegen_flags: <defaults>
</compile_context>

<pallas_src>
import functools
import math

import jax
import jax.numpy as jnp
from jax.experimental import pallas as pl
from jax.experimental.pallas import tpu as pltpu

LN_EPS = 1e-5
NEG_INF = -1e30


def rup(x, m):
    return ((x + m - 1) // m) * m


# ----------------------------------------------------------------------------
# Fused ContextBlock kernel
# ----------------------------------------------------------------------------
def _context_block_kernel(x_ref, mw_ref, mb_ref, w1_ref, b1_ref, g_ref, be_ref,
                          w2_ref, b2_ref, o_ref,
                          m_sc, l_sc, acc_sc, add_sc, *, hw, thw):
    phase = pl.program_id(1)
    t = pl.program_id(2)
    nt = pl.num_programs(2)

    @pl.when(phase == 0)
    def _():
        @pl.when(t == 0)
        def _():
            m_sc[...] = jnp.full_like(m_sc, NEG_INF)
            l_sc[...] = jnp.zeros_like(l_sc)
            acc_sc[...] = jnp.zeros_like(acc_sc)

        x = x_ref[0]                                                  # (THW, C)
        # conv_mask (C -> 1, 1x1): broadcast-multiply + lane reduce; keeps the
        # MXU free and avoids a 1-output-column matmul.
        logit = jnp.sum(x * mw_ref[...], axis=1, keepdims=True) + mb_ref[...]   # (THW, 1)
        row = jax.lax.broadcasted_iota(jnp.int32, logit.shape, 0) + t * thw
        logit = jnp.where(row < hw, logit, NEG_INF)                   # mask pad rows

        # Online softmax over HW (numerically identical to two-pass softmax).
        m_old = m_sc[...]                                             # (1, 1)
        m_new = jnp.maximum(m_old, jnp.max(logit, axis=0, keepdims=True))
        corr = jnp.exp(m_old - m_new)
        p = jnp.exp(logit - m_new)                                    # (THW, 1)
        l_sc[...] = l_sc[...] * corr + jnp.sum(p, axis=0, keepdims=True)
        # Attention-weighted channel sum: broadcast-mul + sublane reduce.
        acc_sc[...] = acc_sc[...] * corr + jnp.sum(p * x, axis=0, keepdims=True)
        m_sc[...] = m_new

        @pl.when(t == nt - 1)
        def _():
            # context: (1, C); channel_add MLP: 1x1 conv -> LayerNorm -> ReLU -> 1x1 conv
            ctx = acc_sc[...] / l_sc[...]
            h = jnp.dot(ctx, w1_ref[...],
                        preferred_element_type=jnp.float32) + b1_ref[...]       # (1, planes)
            mean = jnp.mean(h, axis=1, keepdims=True)
            var = jnp.mean((h - mean) ** 2, axis=1, keepdims=True)    # biased, like torch LayerNorm
            hn = (h - mean) * jax.lax.rsqrt(var + LN_EPS) * g_ref[...] + be_ref[...]
            hn = jnp.maximum(hn, 0.0)
            add_sc[...] = jnp.dot(hn, w2_ref[...],
                                  preferred_element_type=jnp.float32) + b2_ref[...]  # (1, C)

    @pl.when(phase == 1)
    def _():
        # Broadcast residual add, streamed over HW tiles.
        o_ref[0] = x_ref[0] + add_sc[...]


def context_block_forward(params, x_nchw):
    """ContextBlock forward. x: (N, C, H, W) float32 -> (N, C, H, W) float32."""
    N, C, H, W = x_nchw.shape
    HW = H * W
    planes = params["w1"].shape[0]                     # torch layout (planes, C, 1, 1)

    # NCHW -> (N, HW, C): channels on the 128-lane axis, spatial on sublanes.
    xf = jnp.transpose(x_nchw, (0, 2, 3, 1)).reshape(N, HW, C).astype(jnp.float32)

    # Large row tiles for the mem-bound streaming passes; pad HW once to a
    # multiple of the tile; padded rows are masked inside the kernel.
    thw = max(8, min(512, rup(HW, 8)))
    hwp = rup(HW, thw)
    if hwp != HW:
        xf = jnp.pad(xf, ((0, 0), (0, hwp - HW), (0, 0)))
    nt = hwp // thw

    mw = params["mask_w"][:, :, 0, 0].reshape(1, C)
    mb = params["mask_b"].reshape(1, 1)
    w1 = params["w1"][:, :, 0, 0].T                    # (C, planes)
    b1 = params["b1"].reshape(1, planes)
    g = params["ln_g"].reshape(1, planes)
    be = params["ln_b"].reshape(1, planes)
    w2 = params["w2"][:, :, 0, 0].T                    # (planes, C)
    b2 = params["b2"].reshape(1, C)

    def full2d(shape):
        return pl.BlockSpec(shape, lambda n, ph, t: (0, 0))

    out = pl.pallas_call(
        functools.partial(_context_block_kernel, hw=HW, thw=thw),
        out_shape=jax.ShapeDtypeStruct((N, hwp, C), jnp.float32),
        grid=(N, 2, nt),
        in_specs=[
            pl.BlockSpec((1, thw, C), lambda n, ph, t: (n, t, 0)),    # x tiles
            full2d((1, C)),          # conv_mask weight
            full2d((1, 1)),          # conv_mask bias
            full2d((C, planes)),     # channel_add conv1 weight
            full2d((1, planes)),     # channel_add conv1 bias
            full2d((1, planes)),     # LayerNorm gamma
            full2d((1, planes)),     # LayerNorm beta
            full2d((planes, C)),     # channel_add conv2 weight
            full2d((1, C)),          # channel_add conv2 bias
        ],
        # phase 0 parks the output block at (n, 0) (kept resident, never flushed
        # with garbage); phase 1 streams the correct blocks (n, t).
        out_specs=pl.BlockSpec((1, thw, C), lambda n, ph, t: (n, ph * t, 0)),
        scratch_shapes=[
            pltpu.VMEM((1, 1), jnp.float32),   # running softmax max
            pltpu.VMEM((1, 1), jnp.float32),   # running softmax denom
            pltpu.VMEM((1, C), jnp.float32),   # running weighted channel sum
            pltpu.VMEM((1, C), jnp.float32),   # channel_add term
        ],
        compiler_params=pltpu.CompilerParams(
            dimension_semantics=("parallel", "arbitrary", "arbitrary")),
    )(xf, mw, mb, w1, b1, g, be, w2, b2)

    out = out[:, :HW, :].reshape(N, H, W, C)
    return jnp.transpose(out, (0, 3, 1, 2))


# ----------------------------------------------------------------------------
# Parameters & pure-JAX reference
# ----------------------------------------------------------------------------
def make_params(key, C, ratio):
    planes = int(C * ratio)
    ks = jax.random.split(key, 5)
    return {
        # conv_mask: kaiming fan_in init, zero bias (matches reset_parameters)
        "mask_w": math.sqrt(2.0 / C) * jax.random.normal(ks[0], (1, C, 1, 1), jnp.float32),
        "mask_b": jnp.zeros((1,), jnp.float32),
        "w1": math.sqrt(2.0 / C) * jax.random.normal(ks[1], (planes, C, 1, 1), jnp.float32),
        "b1": 0.01 * jax.random.normal(ks[2], (planes,), jnp.float32),
        "ln_g": jnp.ones((planes,), jnp.float32),
        "ln_b": jnp.zeros((planes,), jnp.float32),
        # NOTE: PyTorch's last_zero_init zeroes this conv (forward would reduce to
        # identity); use small random weights so the channel_add path is exercised.
        "w2": 0.1 * jax.random.normal(ks[3], (C, planes, 1, 1), jnp.float32),
        "b2": 0.01 * jax.random.normal(ks[4], (C,), jnp.float32),
    }


def context_block_ref(params, x):
    """Plain-JAX reference mirroring the PyTorch module (att pool + channel_add)."""
    N, C, H, W = x.shape
    xf = x.reshape(N, C, H * W)
    mw = params["mask_w"][:, :, 0, 0].reshape(C)
    logits = jnp.einsum("ncs,c->ns", xf, mw) + params["mask_b"][0]
    p = jax.nn.softmax(logits, axis=1)
    context = jnp.einsum("ncs,ns->nc", xf, p)
    h = context @ params["w1"][:, :, 0, 0].T + params["b1"]
    mean = h.mean(axis=1, keepdims=True)
    var = ((h - mean) ** 2).mean(axis=1, keepdims=True)
    hn = (h - mean) / jnp.sqrt(var + LN_EPS) * params["ln_g"] + params["ln_b"]
    hn = jnp.maximum(hn, 0.0)
    add = hn @ params["w2"][:, :, 0, 0].T + params["b2"]
    return x + add[:, :, None, None]


# ----------------------------------------------------------------------------
if __name__ == "__main__":
    N, C, H, W = 2, 32, 16, 16
    RATIO = 0.25

    key = jax.random.PRNGKey(0)
    k_p, k_x = jax.random.split(key)
    params = make_params(k_p, C, RATIO)
    x = jax.random.normal(k_x, (N, C, H, W), jnp.float32)

    fwd = jax.jit(lambda inp: context_block_forward(params, inp))
    out = jax.block_until_ready(fwd(x))

    assert out.shape == (N, C, H, W), out.shape
    assert bool(jnp.all(jnp.isfinite(out)))

    ref = context_block_ref(params, x)
    err = float(jnp.max(jnp.abs(out - ref)))
    assert err < 1e-4, f"max abs err vs reference: {err}"

    print("KERNEL_OK")
</pallas_src>

<mosaic_0001>
module attributes {stable_mosaic.version = 11 : i64} {
  func.func @_context_block_kernel(%arg0: i32, %arg1: i32, %arg2: i32, %arg3: memref<1x256x32xf32, #tpu.memory_space<vmem>>, %arg4: memref<1x32xf32, #tpu.memory_space<vmem>>, %arg5: memref<1x1xf32, #tpu.memory_space<vmem>>, %arg6: memref<32x8xf32, #tpu.memory_space<vmem>>, %arg7: memref<1x8xf32, #tpu.memory_space<vmem>>, %arg8: memref<1x8xf32, #tpu.memory_space<vmem>>, %arg9: memref<1x8xf32, #tpu.memory_space<vmem>>, %arg10: memref<8x32xf32, #tpu.memory_space<vmem>>, %arg11: memref<1x32xf32, #tpu.memory_space<vmem>>, %arg12: memref<1x256x32xf32, #tpu.memory_space<vmem>>, %arg13: memref<1x1xf32, #tpu.memory_space<vmem>>, %arg14: memref<1x1xf32, #tpu.memory_space<vmem>>, %arg15: memref<1x32xf32, #tpu.memory_space<vmem>>, %arg16: memref<1x32xf32, #tpu.memory_space<vmem>>) attributes {dimension_semantics = [#tpu.dimension_semantics<parallel>, #tpu.dimension_semantics<arbitrary>, #tpu.dimension_semantics<arbitrary>], iteration_bounds = array<i64: 2, 2, 1>, scalar_prefetch = 0 : i64, scratch_operands = 4 : i64, tpu.core_type = #tpu.core_type<tc>, window_params = [{transform_indices = @transform_0, window_bounds = array<i64: 1, 256, 32>}, {pipeline_mode = #tpu.pipeline_mode<synchronous>, transform_indices = @transform_1, window_bounds = array<i64: 1, 32>}, {pipeline_mode = #tpu.pipeline_mode<synchronous>, transform_indices = @transform_2, window_bounds = array<i64: 1, 1>}, {pipeline_mode = #tpu.pipeline_mode<synchronous>, transform_indices = @transform_3, window_bounds = array<i64: 32, 8>}, {pipeline_mode = #tpu.pipeline_mode<synchronous>, transform_indices = @transform_4, window_bounds = array<i64: 1, 8>}, {pipeline_mode = #tpu.pipeline_mode<synchronous>, transform_indices = @transform_5, window_bounds = array<i64: 1, 8>}, {pipeline_mode = #tpu.pipeline_mode<synchronous>, transform_indices = @transform_6, window_bounds = array<i64: 1, 8>}, {pipeline_mode = #tpu.pipeline_mode<synchronous>, transform_indices = @transform_7, window_bounds = array<i64: 8, 32>}, {pipeline_mode = #tpu.pipeline_mode<synchronous>, transform_indices = @transform_8, window_bounds = array<i64: 1, 32>}, {transform_indices = @transform_9, window_bounds = array<i64: 1, 256, 32>}]} {
    %c0_i32 = arith.constant 0 : i32
    %0 = arith.cmpi eq, %arg1, %c0_i32 : i32
    %1 = arith.extui %0 : i1 to i32
    %c0_i32_0 = arith.constant 0 : i32
    %2 = arith.cmpi ne, %1, %c0_i32_0 : i32
    scf.if %2 {
      %c0_i32_2 = arith.constant 0 : i32
      %6 = arith.cmpi eq, %arg2, %c0_i32_2 : i32
      %7 = arith.extui %6 : i1 to i32
      %c0_i32_3 = arith.constant 0 : i32
      %8 = arith.cmpi ne, %7, %c0_i32_3 : i32
      scf.if %8 {
        %cst_29 = arith.constant -1.000000e+30 : f32
        %55 = vector.broadcast %cst_29 : f32 to vector<1x1xf32>
        %c0_30 = arith.constant 0 : index
        %c0_31 = arith.constant 0 : index
        %56 = vector.load %arg13[%c0_30, %c0_31] : memref<1x1xf32, #tpu.memory_space<vmem>>, vector<1x1xf32>
        tpu.vector_store %arg13[%c0_30, %c0_31], %55 {strides = array<i32>} : memref<1x1xf32, #tpu.memory_space<vmem>>, vector<1x1xf32>,
        %cst_32 = arith.constant 0.000000e+00 : f32
        %57 = vector.broadcast %cst_32 : f32 to vector<1x1xf32>
        %c0_33 = arith.constant 0 : index
        %c0_34 = arith.constant 0 : index
        %58 = vector.load %arg14[%c0_33, %c0_34] : memref<1x1xf32, #tpu.memory_space<vmem>>, vector<1x1xf32>
        tpu.vector_store %arg14[%c0_33, %c0_34], %57 {strides = array<i32>} : memref<1x1xf32, #tpu.memory_space<vmem>>, vector<1x1xf32>,
        %cst_35 = arith.constant 0.000000e+00 : f32
        %59 = vector.broadcast %cst_35 : f32 to vector<1x32xf32>
        %c0_36 = arith.constant 0 : index
        %c0_37 = arith.constant 0 : index
        %60 = vector.load %arg15[%c0_36, %c0_37] : memref<1x32xf32, #tpu.memory_space<vmem>>, vector<1x32xf32>
        tpu.vector_store %arg15[%c0_36, %c0_37], %59 {strides = array<i32>} : memref<1x32xf32, #tpu.memory_space<vmem>>, vector<1x32xf32>,
      } else {
      }
      %c0 = arith.constant 0 : index
      %c0_4 = arith.constant 0 : index
      %c0_5 = arith.constant 0 : index
      %9 = vector.load %arg3[%c0, %c0_4, %c0_5] : memref<1x256x32xf32, #tpu.memory_space<vmem>>, vector<1x256x32xf32>
      %10 = vector.shape_cast %9 : vector<1x256x32xf32> to vector<256x32xf32>
      %c0_6 = arith.constant 0 : index
      %c0_7 = arith.constant 0 : index
      %11 = vector.load %arg4[%c0_6, %c0_7] : memref<1x32xf32, #tpu.memory_space<vmem>>, vector<1x32xf32>
      %12 = vector.broadcast %11 : vector<1x32xf32> to vector<256x32xf32>
      %13 = arith.mulf %10, %12 : vector<256x32xf32>
      %cst = arith.constant dense<0.000000e+00> : vector<256xf32>
      %14 = vector.multi_reduction <add>, %13, %cst [1] : vector<256x32xf32> to vector<256xf32>
      %15 = vector.shape_cast %14 : vector<256xf32> to vector<256x1xf32>
      %c0_8 = arith.constant 0 : index
      %c0_9 = arith.constant 0 : index
      %16 = vector.load %arg5[%c0_8, %c0_9] : memref<1x1xf32, #tpu.memory_space<vmem>>, vector<1x1xf32>
      %17 = vector.broadcast %16 : vector<1x1xf32> to vector<256x1xf32>
      %18 = arith.addf %15, %17 : vector<256x1xf32>
      %19 = tpu.iota {dimensions = array<i32: 0>} : vector<256x1xi32>
      %c256_i32 = arith.constant 256 : i32
      %20 = arith.muli %arg2, %c256_i32 : i32
      %21 = vector.broadcast %20 : i32 to vector<256x1xi32>
      %22 = arith.addi %19, %21 : vector<256x1xi32>
      %c256_i32_10 = arith.constant 256 : i32
      %23 = vector.broadcast %c256_i32_10 : i32 to vector<256x1xi32>
      %24 = arith.cmpi slt, %22, %23 : vector<256x1xi32>
      %cst_11 = arith.constant -1.000000e+30 : f32
      %25 = vector.broadcast %cst_11 : f32 to vector<256x1xf32>
      %26 = arith.select %24, %18, %25 : vector<256x1xi1>, vector<256x1xf32>
      %c0_12 = arith.constant 0 : index
      %c0_13 = arith.constant 0 : index
      %27 = vector.load %arg13[%c0_12, %c0_13] : memref<1x1xf32, #tpu.memory_space<vmem>>, vector<1x1xf32>
      %cst_14 = arith.constant dense<0xFF800000> : vector<1xf32>
      %28 = vector.multi_reduction <maximumf>, %26, %cst_14 [0] : vector<256x1xf32> to vector<1xf32>
      %29 = vector.shape_cast %28 : vector<1xf32> to vector<1x1xf32>
      %30 = arith.maximumf %27, %29 : vector<1x1xf32>
      %31 = arith.subf %27, %30 : vector<1x1xf32>
      %32 = math.exp %31 : vector<1x1xf32>
      %33 = vector.broadcast %30 : vector<1x1xf32> to vector<256x1xf32>
      %34 = arith.subf %26, %33 : vector<256x1xf32>
      %35 = math.exp %34 : vector<256x1xf32>
      %c0_15 = arith.constant 0 : index
      %c0_16 = arith.constant 0 : index
      %36 = vector.load %arg14[%c0_15, %c0_16] : memref<1x1xf32, #tpu.memory_space<vmem>>, vector<1x1xf32>
      %37 = arith.mulf %36, %32 : vector<1x1xf32>
      %cst_17 = arith.constant dense<0.000000e+00> : vector<1xf32>
      %38 = vector.multi_reduction <add>, %35, %cst_17 [0] : vector<256x1xf32> to vector<1xf32>
      %39 = vector.shape_cast %38 : vector<1xf32> to vector<1x1xf32>
      %40 = arith.addf %37, %39 : vector<1x1xf32>
      %c0_18 = arith.constant 0 : index
      %c0_19 = arith.constant 0 : index
      %41 = vector.load %arg14[%c0_18, %c0_19] : memref<1x1xf32, #tpu.memory_space<vmem>>, vector<1x1xf32>
      tpu.vector_store %arg14[%c0_18, %c0_19], %40 {strides = array<i32>} : memref<1x1xf32, #tpu.memory_space<vmem>>, vector<1x1xf32>,
      %c0_20 = arith.constant 0 : index
      %c0_21 = arith.constant 0 : index
      %42 = vector.load %arg15[%c0_20, %c0_21] : memref<1x32xf32, #tpu.memory_space<vmem>>, vector<1x32xf32>
      %43 = vector.broadcast %32 : vector<1x1xf32> to vector<1x32xf32>
      %44 = arith.mulf %42, %43 : vector<1x32xf32>
      %45 = vector.broadcast %35 : vector<256x1xf32> to vector<256x32xf32>
      %46 = arith.mulf %45, %10 : vector<256x32xf32>
      %cst_22 = arith.constant dense<0.000000e+00> : vector<32xf32>
      %47 = vector.multi_reduction <add>, %46, %cst_22 [0] : vector<256x32xf32> to vector<32xf32>
      %48 = vector.shape_cast %47 : vector<32xf32> to vector<1x32xf32>
      %49 = arith.addf %44, %48 : vector<1x32xf32>
      %c0_23 = arith.constant 0 : index
      %c0_24 = arith.constant 0 : index
      %50 = vector.load %arg15[%c0_23, %c0_24] : memref<1x32xf32, #tpu.memory_space<vmem>>, vector<1x32xf32>
      tpu.vector_store %arg15[%c0_23, %c0_24], %49 {strides = array<i32>} : memref<1x32xf32, #tpu.memory_space<vmem>>, vector<1x32xf32>,
      %c0_25 = arith.constant 0 : index
      %c0_26 = arith.constant 0 : index
      %51 = vector.load %arg13[%c0_25, %c0_26] : memref<1x1xf32, #tpu.memory_space<vmem>>, vector<1x1xf32>
      tpu.vector_store %arg13[%c0_25, %c0_26], %30 {strides = array<i32>} : memref<1x1xf32, #tpu.memory_space<vmem>>, vector<1x1xf32>,
      %c0_i32_27 = arith.constant 0 : i32
      %52 = arith.cmpi eq, %arg2, %c0_i32_27 : i32
      %53 = arith.extui %52 : i1 to i32
      %c0_i32_28 = arith.constant 0 : i32
      %54 = arith.cmpi ne, %53, %c0_i32_28 : i32
      scf.if %54 {
        %c0_29 = arith.constant 0 : index
        %c0_30 = arith.constant 0 : index
        %55 = vector.load %arg15[%c0_29, %c0_30] : memref<1x32xf32, #tpu.memory_space<vmem>>, vector<1x32xf32>
        %c0_31 = arith.constant 0 : index
        %c0_32 = arith.constant 0 : index
        %56 = vector.load %arg14[%c0_31, %c0_32] : memref<1x1xf32, #tpu.memory_space<vmem>>, vector<1x1xf32>
        %57 = vector.broadcast %56 : vector<1x1xf32> to vector<1x32xf32>
        %58 = arith.divf %55, %57 : vector<1x32xf32>
        %c0_33 = arith.constant 0 : index
        %c0_34 = arith.constant 0 : index
        %59 = vector.load %arg6[%c0_33, %c0_34] : memref<32x8xf32, #tpu.memory_space<vmem>>, vector<32x8xf32>
        %cst_35 = arith.constant dense<0.000000e+00> : vector<1x8xf32>
        %60 = tpu.matmul %58, %59, %cst_35 {dimension_numbers = #tpu.dot_dimension_numbers<[1], [0], [0], [1], [0, 0, 1, 1], [], []>} : vector<1x32xf32>, vector<32x8xf32>, vector<1x8xf32> -> vector<1x8xf32>
        %c0_36 = arith.constant 0 : index
        %c0_37 = arith.constant 0 : index
        %61 = vector.load %arg7[%c0_36, %c0_37] : memref<1x8xf32, #tpu.memory_space<vmem>>, vector<1x8xf32>
        %62 = arith.addf %60, %61 : vector<1x8xf32>
        %cst_38 = arith.constant dense<0.000000e+00> : vector<1xf32>
        %63 = vector.multi_reduction <add>, %62, %cst_38 [1] : vector<1x8xf32> to vector<1xf32>
        %64 = vector.shape_cast %63 : vector<1xf32> to vector<1x1xf32>
        %cst_39 = arith.constant 8.000000e+00 : f32
        %65 = vector.broadcast %cst_39 : f32 to vector<1x1xf32>
        %66 = arith.divf %64, %65 : vector<1x1xf32>
        %67 = vector.broadcast %66 : vector<1x1xf32> to vector<1x8xf32>
        %68 = arith.subf %62, %67 : vector<1x8xf32>
        %69 = arith.mulf %68, %68 : vector<1x8xf32>
        %cst_40 = arith.constant dense<0.000000e+00> : vector<1xf32>
        %70 = vector.multi_reduction <add>, %69, %cst_40 [1] : vector<1x8xf32> to vector<1xf32>
        %71 = vector.shape_cast %70 : vector<1xf32> to vector<1x1xf32>
        %cst_41 = arith.constant 8.000000e+00 : f32
        %72 = vector.broadcast %cst_41 : f32 to vector<1x1xf32>
        %73 = arith.divf %71, %72 : vector<1x1xf32>
        %74 = vector.broadcast %66 : vector<1x1xf32> to vector<1x8xf32>
        %75 = arith.subf %62, %74 : vector<1x8xf32>
        %cst_42 = arith.constant 9.99999974E-6 : f32
        %76 = vector.broadcast %cst_42 : f32 to vector<1x1xf32>
        %77 = arith.addf %73, %76 : vector<1x1xf32>
        %78 = math.rsqrt %77 : vector<1x1xf32>
        %79 = vector.broadcast %78 : vector<1x1xf32> to vector<1x8xf32>
        %80 = arith.mulf %75, %79 : vector<1x8xf32>
        %c0_43 = arith.constant 0 : index
        %c0_44 = arith.constant 0 : index
        %81 = vector.load %arg8[%c0_43, %c0_44] : memref<1x8xf32, #tpu.memory_space<vmem>>, vector<1x8xf32>
        %82 = arith.mulf %80, %81 : vector<1x8xf32>
        %c0_45 = arith.constant 0 : index
        %c0_46 = arith.constant 0 : index
        %83 = vector.load %arg9[%c0_45, %c0_46] : memref<1x8xf32, #tpu.memory_space<vmem>>, vector<1x8xf32>
        %84 = arith.addf %82, %83 : vector<1x8xf32>
        %cst_47 = arith.constant 0.000000e+00 : f32
        %85 = vector.broadcast %cst_47 : f32 to vector<1x8xf32>
        %86 = arith.maximumf %84, %85 : vector<1x8xf32>
        %c0_48 = arith.constant 0 : index
        %c0_49 = arith.constant 0 : index
        %87 = vector.load %arg10[%c0_48, %c0_49] : memref<8x32xf32, #tpu.memory_space<vmem>>, vector<8x32xf32>
        %cst_50 = arith.constant dense<0.000000e+00> : vector<1x32xf32>
        %88 = tpu.matmul %86, %87, %cst_50 {dimension_numbers = #tpu.dot_dimension_numbers<[1], [0], [0], [1], [0, 0, 1, 1], [], []>} : vector<1x8xf32>, vector<8x32xf32>, vector<1x32xf32> -> vector<1x32xf32>
        %c0_51 = arith.constant 0 : index
        %c0_52 = arith.constant 0 : index
        %89 = vector.load %arg11[%c0_51, %c0_52] : memref<1x32xf32, #tpu.memory_space<vmem>>, vector<1x32xf32>
        %90 = arith.addf %88, %89 : vector<1x32xf32>
        %c0_53 = arith.constant 0 : index
        %c0_54 = arith.constant 0 : index
        %91 = vector.load %arg16[%c0_53, %c0_54] : memref<1x32xf32, #tpu.memory_space<vmem>>, vector<1x32xf32>
        tpu.vector_store %arg16[%c0_53, %c0_54], %90 {strides = array<i32>} : memref<1x32xf32, #tpu.memory_space<vmem>>, vector<1x32xf32>,
      } else {
      }
    } else {
    }
    %c1_i32 = arith.constant 1 : i32
    %3 = arith.cmpi eq, %arg1, %c1_i32 : i32
    %4 = arith.extui %3 : i1 to i32
    %c0_i32_1 = arith.constant 0 : i32
    %5 = arith.cmpi ne, %4, %c0_i32_1 : i32
    scf.if %5 {
      %c0 = arith.constant 0 : index
      %c0_2 = arith.constant 0 : index
      %c0_3 = arith.constant 0 : index
      %6 = vector.load %arg3[%c0, %c0_2, %c0_3] : memref<1x256x32xf32, #tpu.memory_space<vmem>>, vector<1x256x32xf32>
      %7 = vector.shape_cast %6 : vector<1x256x32xf32> to vector<256x32xf32>
      %c0_4 = arith.constant 0 : index
      %c0_5 = arith.constant 0 : index
      %8 = vector.load %arg16[%c0_4, %c0_5] : memref<1x32xf32, #tpu.memory_space<vmem>>, vector<1x32xf32>
      %9 = vector.broadcast %8 : vector<1x32xf32> to vector<256x32xf32>
      %10 = arith.addf %7, %9 : vector<256x32xf32>
      %c0_6 = arith.constant 0 : index
      %c0_7 = arith.constant 0 : index
      %c0_8 = arith.constant 0 : index
      %11 = vector.load %arg12[%c0_6, %c0_7, %c0_8] : memref<1x256x32xf32, #tpu.memory_space<vmem>>, vector<1x256x32xf32>
      %12 = vector.shape_cast %11 : vector<1x256x32xf32> to vector<256x32xf32>
      %13 = vector.shape_cast %10 : vector<256x32xf32> to vector<1x256x32xf32>
      tpu.vector_store %arg12[%c0_6, %c0_7, %c0_8], %13 {strides = array<i32>} : memref<1x256x32xf32, #tpu.memory_space<vmem>>, vector<1x256x32xf32>,
    } else {
    }
    return
  }
  func.func @transform_0(%arg0: i32, %arg1: i32, %arg2: i32) -> (i32, i32, i32) {
    %c0_i32 = arith.constant 0 : i32
    %c0_i32_0 = arith.constant 0 : i32
    return %arg0, %arg2, %c0_i32 : i32, i32, i32
  }
  func.func @transform_1(%arg0: i32, %arg1: i32, %arg2: i32) -> (i32, i32) {
    %c0_i32 = arith.constant 0 : i32
    %c0_i32_0 = arith.constant 0 : i32
    %c0_i32_1 = arith.constant 0 : i32
    return %c0_i32, %c0_i32_0 : i32, i32
  }
  func.func @transform_2(%arg0: i32, %arg1: i32, %arg2: i32) -> (i32, i32) {
    %c0_i32 = arith.constant 0 : i32
    %c0_i32_0 = arith.constant 0 : i32
    %c0_i32_1 = arith.constant 0 : i32
    return %c0_i32, %c0_i32_0 : i32, i32
  }
  func.func @transform_3(%arg0: i32, %arg1: i32, %arg2: i32) -> (i32, i32) {
    %c0_i32 = arith.constant 0 : i32
    %c0_i32_0 = arith.constant 0 : i32
    %c0_i32_1 = arith.constant 0 : i32
    return %c0_i32, %c0_i32_0 : i32, i32
  }
  func.func @transform_4(%arg0: i32, %arg1: i32, %arg2: i32) -> (i32, i32) {
    %c0_i32 = arith.constant 0 : i32
    %c0_i32_0 = arith.constant 0 : i32
    %c0_i32_1 = arith.constant 0 : i32
    return %c0_i32, %c0_i32_0 : i32, i32
  }
  func.func @transform_5(%arg0: i32, %arg1: i32, %arg2: i32) -> (i32, i32) {
    %c0_i32 = arith.constant 0 : i32
    %c0_i32_0 = arith.constant 0 : i32
    %c0_i32_1 = arith.constant 0 : i32
    return %c0_i32, %c0_i32_0 : i32, i32
  }
  func.func @transform_6(%arg0: i32, %arg1: i32, %arg2: i32) -> (i32, i32) {
    %c0_i32 = arith.constant 0 : i32
    %c0_i32_0 = arith.constant 0 : i32
    %c0_i32_1 = arith.constant 0 : i32
    return %c0_i32, %c0_i32_0 : i32, i32
  }
  func.func @transform_7(%arg0: i32, %arg1: i32, %arg2: i32) -> (i32, i32) {
    %c0_i32 = arith.constant 0 : i32
    %c0_i32_0 = arith.constant 0 : i32
    %c0_i32_1 = arith.constant 0 : i32
    return %c0_i32, %c0_i32_0 : i32, i32
  }
  func.func @transform_8(%arg0: i32, %arg1: i32, %arg2: i32) -> (i32, i32) {
    %c0_i32 = arith.constant 0 : i32
    %c0_i32_0 = arith.constant 0 : i32
    %c0_i32_1 = arith.constant 0 : i32
    return %c0_i32, %c0_i32_0 : i32, i32
  }
  func.func @transform_9(%arg0: i32, %arg1: i32, %arg2: i32) -> (i32, i32, i32) {
    %0 = arith.muli %arg1, %arg2 : i32
    %c0_i32 = arith.constant 0 : i32
    %c0_i32_0 = arith.constant 0 : i32
    return %arg0, %0, %c0_i32 : i32, i32, i32
  }
}

</mosaic_0001>

<bundles_post_ra>
// kernel: _lambda_.1
= control target key start
LH: loop header
LB: loop body
LE: loop exit
PB: predicated region body
PF: predicated region fallthrough
CT: control target
= control target key end

     0   :  { %s3137_s0 = inlined_call_operand.hbm [shape: f32[2,256,32], index: 0, kind: input, shape index: {}]   ;;  %s3138_s1 = inlined_call_operand.vmem [shape: f32[1,32], index: 1, kind: input, shape index: {}]   ;;  %s3139_s2 = inlined_call_operand.<no memory space> [shape: f32[1,1], index: 2, kind: input, shape index: {}]   ;;  %s3140_s3 = inlined_call_operand.vmem [shape: f32[32,8], index: 3, kind: input, shape index: {}]   ;;  %s3141_s4 = inlined_call_operand.vmem [shape: f32[1,8], index: 4, kind: input, shape index: {}]   ;;  %s3142_s5 = inlined_call_operand.vmem [shape: f32[1,8], index: 5, kind: input, shape index: {}]   ;;  %s3143_s6 = inlined_call_operand.vmem [shape: f32[1,8], index: 6, kind: input, shape index: {}]   ;;  %s3144_s7 = inlined_call_operand.hbm [shape: f32[8,32], index: 7, kind: input, shape index: {}]   ;;  %s3145_s8 = inlined_call_operand.hbm [shape: f32[1,32], index: 8, kind: input, shape index: {}]   ;;  %s3146_s9 = inlined_call_operand.hbm [shape: f32[2,256,32], index: 9, kind: output, shape index: {}]  }
   0x1   :  { %3158 = sst [smem:[#allocation20_spill]] %s3144_s7  ;;  %v14_v0 = vstv %s3139_s2 }
   0x2   :  { %3159 = sst [smem:[#allocation21_spill]] %s3145_s8  ;;  %15 = vst [vmem:[#allocation6] sm:$0x1] %v14_v0 }
   0x3   :  { %3160 = sst [smem:[#allocation22_spill]] %s3146_s9 }
   0x4   :  { %16 = vsyncpa [#allocation8], 0 }
   0x5   :  { %18 = vsyncpa [#allocation8 + $0x1], 0 }
   0x6   :  { %19 = vsyncpa [#allocation11], 0 }
   0x7   :  { %20 = vsyncpa [#allocation9], 0 }
   0x8   :  { %22 = vsyncpa [#allocation9 + $0x1], 0  ;;  %s2239_s11 = smov 0   ;;  %s2241_s12 = smov 0  }
   0x9   :  { %s2243_s13 = smov 0   ;;  %s2245_s14 = smov 0  }
   0xa   :  { %s2247_s15 = smov 0   ;;  %s2249_s16 = smov 0  }
   0xb   :  { %s2251_s17 = smov 0   ;;  %s2253_s2 = smov 0  }
   0xc LB: > { %3161 = sst [smem:[#allocation17_spill]] %s2143_s11  ;;  %s1714_s18 = sadd.s32 4294967295, %s2171_s2   ;;  %s2171_s2 = sphi %s2253_s2, %s28_s2   ;;  %s2167_s17 = sphi %s2251_s17, %s3193_s17   ;;  %s2163_s16 = sphi %s2249_s16, %s3192_s16   ;;  %s2159_s15 = sphi %s2247_s15, %s3191_s15   ;;  %s2155_s14 = sphi %s2245_s14, %s3190_s14   ;;  %s2151_s13 = sphi %s2243_s13, %s3189_s13   ;;  %s2147_s12 = sphi %s2241_s12, %s3188_s12   ;;  %s2143_s11 = sphi %s2239_s11, %s3187_s11  }
   0xd   : > { %3162 = sst [smem:[#allocation18_spill]] %s2171_s2  ;;  %s1715_s19 = sadd.s32 4294967294, %s2171_s2  }
   0xe   : > { %p63_p0 = scmp.ne.s32.totalorder %s2151_s13, %s2147_s12  ;;  %p64_p1 = scmp.eq.s32.totalorder %s2171_s2, 0 }
   0xf   : > { %p69_p2 = scmp.ne.s32.totalorder %s2147_s12, %s2143_s11  ;;  %p2286_p3 = scmp.eq.s32.totalorder %s1714_s18, 0 }
  0x10   : > { %p265_p4 = scmp.eq.s32.totalorder %s1714_s18, 3  ;;  %p2290_p5 = por %p64_p1, %p63_p0 }
  0x11   : > { %s3163_s20 = scalar_select %p2286_p3, 1, 0 }
  0x12   : > { %p271_p6 = scmp.eq.s32.totalorder %s1715_s19, 3  ;;  %p2296_p7 = por %p2286_p3, %p69_p2 }
  0x13   : > { %p2300_p8 = por %p265_p4, %p63_p0  ;;  %p1716_p10 = scmp.ge.s32.totalorder %s2171_s2, 1 }
  0x14   : > { %s3165_s22 = scalar_select %p2296_p7, 1, 0 }
  0x15   : > { %s3166_s23 = scalar_select %p2300_p8, 1, 0 }
  0x16   : > { %p2304_p9 = por %p271_p6, %p69_p2  ;;  %p278_p11 = scmp.lt.s32.totalorder %s2171_s2, 5 }
  0x17   : > { %s2173_s26 = smov [#allocation10]   ;;  %p1800_p13 = scmp.lt.s32.totalorder %s2171_s2, 4 }
  0x18   : > { %s3167_s24 = scalar_select %p2304_p9, 1, 0 }
  0x19   : > { %p2310_p12 = pnand %p1716_p10, %p278_p11  ;;  %s309_s27 = sshll.u32 %s2173_s26, 4  ;;  %s310_s27 = int_to_ptr.vmem [resolvable:$true] %s309_s27 }
  0x1a   : > { %3168 = sst [smem:[#allocation19_spill]] %s3167_s24  ;;  %p2319_p1 = pnand %p1800_p13, %p2290_p5 }
  0x1b   : > { %s3169_s25 = scalar_select %p2310_p12, 1, 0 }
  0x1c   : > { %p1783_p0 = pneg %p2310_p12  ;;  %s2174_s29 = smov [#allocation12]  }
  0x1d   : > { %s3170_s28 = scalar_select %p2319_p1, 1, 0 }
  0x1e   : > { %s320_s30 = sshll.u32 %s2174_s29, 4  ;;  %p2325_p2 = pnand %p1783_p0, %p2286_p3  ;;  %s2329_s30 = int_to_ptr.vmem [resolvable:$true] %s320_s30 }
  0x1f   : > { %s3172_s7 = sld [smem:[#allocation20_spill]] }
  0x20   : > { %p1985_p5 = pneg %p2325_p2 }
  0x25   : > { %s1983_s26 = scalar_lea.hbm %s3172_s7, 128 }
  0x26   : > { %p1984_p4 = scmp.ne.s32.totalorder %s3172_s7, %s1983_s26  ;;  %p1990_p11 = scmp.lt.u32.totalorder %s1983_s26, %s3172_s7 }
  0x28   : > { %p1986_p6 = pnand %p1985_p5, %p1984_p4 }
  0x2a   : > { %p1987_p10 = pneg %p1986_p6 }
  0x2c   : > { %p1992_p13 = pnand %p1990_p11, %p1987_p10 }
  0x2e   : > { %1995 = shalt.err (!%p1992_p13)
}
  0x2f   : > { %s1996_s2 = scalar_lea.vmem %s310_s27, 128  ;;  %p2004_p3 = scmp.lt.s32.totalorder %s310_s27, %s310_s27 }
  0x30   : > { %p1997_p0 = scmp.ne.s32.totalorder %s310_s27, %s1996_s2  ;;  %p2005_p7 = scmp.lt.s32.totalorder %s1996_s2, %s1996_s2 }
  0x32   : > { %p1999_p9 = pnand %p1997_p0, %p1985_p5  ;;  %p2006_p12 = por %p2005_p7, %p2004_p3 }
  0x34   : > { %p2000_p8 = pneg %p1999_p9 }
  0x36   : > { %p2007_p1 = pnand %p2006_p12, %p2000_p8 }
  0x38   : > { %2010 = shalt.err (!%p2007_p1)
}
  0x39   : > { %1786 = dma.hbm_to_vmem [thread:$0]  (!%p2325_p2), %s3172_s7, 128, %s310_s27, [#allocation11]  }
  0x3a   : > { %s3173_s8 = sld [smem:[#allocation21_spill]] }
  0x40   : > { %s2011_s26 = scalar_lea.hbm %s3173_s8, 16 }
  0x41   : > { %p2012_p9 = scmp.ne.s32.totalorder %s3173_s8, %s2011_s26  ;;  %p2018_p8 = scmp.lt.u32.totalorder %s2011_s26, %s3173_s8 }
  0x43   : > { %p2014_p3 = pnand %p2012_p9, %p1985_p5 }
  0x45   : > { %p2015_p7 = pneg %p2014_p3 }
  0x47   : > { %p2020_p12 = pnand %p2018_p8, %p2015_p7 }
  0x49   : > { %2023 = shalt.err (!%p2020_p12)
}
  0x4a   : > { %s2024_s27 = scalar_lea.vmem %s2329_s30, 16  ;;  %s2031_s24 = scalar_lea.vmem %s2329_s30, 32 }
  0x4b   : > { %p2025_p1 = scmp.ne.s32.totalorder %s2329_s30, %s2024_s27  ;;  %p2032_p10 = scmp.lt.s32.totalorder %s2329_s30, %s2329_s30 }
  0x4c   : > { %p2033_p11 = scmp.lt.s32.totalorder %s2031_s24, %s2024_s27 }
  0x4d   : > { %p2027_p4 = pnand %p2025_p1, %p1985_p5 }
  0x4e   : > { %p2034_p13 = por %p2033_p11, %p2032_p10 }
  0x4f   : > { %p2028_p6 = pneg %p2027_p4 }
  0x51   : > { %p2035_p0 = pnand %p2034_p13, %p2028_p6 }
  0x53   : > { %2038 = shalt.err (!%p2035_p0)
}
  0x54   : > { %1789 = dma.hbm_to_vmem [thread:$0]  (!%p2325_p2), %s3173_s8, 16, %s2329_s30, [#allocation11]  }
  0x55   : > { %s43_s11 = sadd.s32 1, %s2163_s16  ;;  %s47_s19 = sadd.s32 1, %s2167_s17 }
  0x56   : > { %p45_p5 = scmp.ge.s32.totalorder %s43_s11, 2  ;;  %s331_s26 = sand.u32 1, %s2151_s13  }
  0x57   : > { %s1720_s21 = sshll.u32 %s331_s26, 8  ;;  %s1740_s10 = sshll.u32 %s2167_s17, 12 }
  0x58   : > { %s3195_s11 = smov (%p45_p5, %s43_s11), 0  ;;  %s3197_s19 = smov (!%p45_p5, %s47_s19), %s2167_s17 }
  0x59   : > { %p49_p9 = scmp.ge.s32.totalorder %s3197_s19, 2  ;;  %s2389_s27 = scalar_lea.hbm %s3137_s0, %s1740_s10 }
  0x5a   : > { %s335_s30 = scalar_lea.vmem [#allocation7], %s1720_s21  ;;  %s2402_s29 = scalar_lea.sflag [#allocation8], %s331_s26 }
  0x5b   : > { %s344_s24 = sshll.u32 %s335_s30, 4  ;;  %s3199_s19 = smov (%p49_p9, %s3197_s19), 0  ;;  %s2393_s24 = int_to_ptr.vmem [resolvable:$true] %s344_s24 }
  0x5c   : > { %s51_s18 = ssub.s32 %s2167_s17, %s3199_s19  ;;  %s2039_s10 = scalar_lea.hbm %s2389_s27, 4096 }
  0x5d   : > { %p2398_p2 = scmp.eq.s32.totalorder %s51_s18, 0  ;;  %p2040_p3 = scmp.ne.s32.totalorder %s2389_s27, %s2039_s10 }
  0x5e   : > { %p3175_p7 = scmp.ne.s32.totalorder %s3170_s28, 0  ;;  %s2044_s30 = scalar_lea.hbm %s3137_s0, 8192 }
  0x5f   : > { %p2045_p4 = scmp.lt.u32.totalorder %s2389_s27, %s3137_s0  ;;  %p2046_p6 = scmp.lt.u32.totalorder %s2044_s30, %s2039_s10 }
  0x60   : > { %p2041_p8 = pneg %p3175_p7  ;;  %p2048_p11 = scmp.lt.u32.totalorder %s2039_s10, %s2389_s27 }
  0x61   : > { %p2047_p10 = por %p2046_p6, %p2045_p4 }
  0x62   : > { %p2042_p12 = pnand %p2041_p8, %p2040_p3 }
  0x63   : > { %p2049_p13 = por %p2048_p11, %p2047_p10 }
  0x64   : > { %p2043_p1 = pneg %p2042_p12 }
  0x66   : > { %p2050_p0 = pnand %p2049_p13, %p2043_p1 }
  0x68   : > { %2053 = shalt.err (!%p2050_p0)
}
  0x69   : > { %s2054_s26 = scalar_lea.vmem %s2393_s24, 4096  ;;  %s2175_s18 = smov [#allocation7]  }
  0x6a   : > { %p2055_p5 = scmp.ne.s32.totalorder %s2393_s24, %s2054_s26  ;;  %s2059_s21 = sshll.u32 %s2175_s18, 4  ;;  %s2060_s21 = int_to_ptr.vmem [resolvable:$false] %s2059_s21 }
  0x6b   : > { %s2061_s8 = scalar_lea.vmem %s2060_s21, 8192  ;;  %p2062_p12 = scmp.lt.s32.totalorder %s2393_s24, %s2060_s21 }
  0x6c   : > { %p2057_p9 = pnand %p2055_p5, %p2041_p8  ;;  %p2063_p4 = scmp.lt.s32.totalorder %s2061_s8, %s2054_s26 }
  0x6e   : > { %p2058_p3 = pneg %p2057_p9  ;;  %p2064_p6 = por %p2063_p4, %p2062_p12 }
  0x70   : > { %p2065_p10 = pnand %p2064_p6, %p2058_p3 }
  0x72   : > { %2068 = shalt.err (!%p2065_p10)
}
  0x73   : > { %s2176_s9 = smov 128   ;;  %s2177_s10 = smov 8  }
  0x74   : > { %1793 = dma.hbm_to_vmem [thread:$0]  (!%p3175_p7), %s2389_s27, 4096, %s2393_s24, %s2402_s29, %s2176_s9, %s2176_s9, %s2177_s10  }
  0x75   : > { %s3176_s2 = sadd.s32 1, %s2151_s13  ;;  %p3177_p8 = scmp.ne.s32.totalorder %s3169_s25, 0 }
  0x76   : > { %s2435_s30 = scalar_select %p2398_p2, %s2151_s13, %s3176_s2  }
  0x77   : > { %356 = sbr.rel (%p3177_p8) target bundleno = 1405 (0x57d), region = 56  ;;  %s2440_s26 = sand.u32 (!%p3177_p8), 1, %s2147_s12  }
  0x78   : > { %s1724_s18 = sshll.u32 (!%p3177_p8), %s2440_s26, 8  ;;  %s359_s21 = scalar_lea.sflag (!%p3177_p8), [#allocation8], %s2440_s26 }
  0x79   : > { %s2444_s8 = scalar_lea.vmem (!%p3177_p8), [#allocation7], %s1724_s18  ;;  %p3178_p1 = scmp.ne.s32.totalorder (!%p3177_p8), %s3165_s22, 0 }
  0x7e   : > { %2130 = dma.done.wait (%p3178_p1), %s359_s21, 4096  }
  0x7f   : > { %2132 = vsyncadd (%p3178_p1), %s359_s21, 4294963200  ;;  %p3179_p2 = scmp.ne.s32.totalorder %s3163_s20, 0 }
  0x81   : > { %2134 = dma.done.wait (%p3179_p2), [#allocation11], 144  }
  0x82   : > { %2136 = vsyncadd (%p3179_p2), [#allocation11], 4294967152  ;;  %s2454_s7 = scalar_lea.vmem [#allocation13], %s1724_s18  ;;  %p1728_p7 = scmp.ne.s32.totalorder %s2155_s14, 0 }
  0x83   : > { %v423_v1 = vld [vmem:[%s2444_s8 + $0x10] sm:$0xff] (!%p1728_p7)  ;;  %v2461_v2 = vld [vmem:[%s3138_s1] ss:$0 sm:$0xff] (!%p1728_p7)  ;;  %vm492_vm0 = vcmask (!%p1728_p7), 261120   ;;  %v421_v3 = vld [vmem:[%s2444_s8] sm:$0xff] (!%p1728_p7)  ;;  %vm416_vm1 = vcmask (!%p1728_p7), 0  }
  0x84   : > { %411 = sbr.rel (%p1728_p7) target bundleno = 1353 (0x549), region = 72  ;;  %v462_v4 = vmul.f32 (!%p1728_p7), %v2461_v2, %v423_v1  ;;  %v460_v5 = vmul.f32 (!%p1728_p7), %v2461_v2, %v421_v3  ;;  %v424_v6 = vld [vmem:[%s2444_s8 + $0x18] sm:$0xff] (!%p1728_p7)  ;;  %v422_v7 = vld [vmem:[%s2444_s8 + $0x8] sm:$0xff] (!%p1728_p7)  ;;  %v425_v11 = vld [vmem:[%s2444_s8 + $0x20] sm:$0xff] (!%p1728_p7)  ;;  %vm760_vm2 = vcmask (!%p1728_p7), 7168   ;;  %vm419_vm3 = vcmask (!%p1728_p7), 253952  }
  0x85   : > { %v463_v8 = vmul.f32 (!%p1728_p7), %v2461_v2, %v424_v6  ;;  %v461_v9 = vmul.f32 (!%p1728_p7), %v2461_v2, %v422_v7  ;;  %v426_v10 = vld [vmem:[%s2444_s8 + $0x28] sm:$0xff] (!%p1728_p7)  ;;  %v464_v17 = vmul.f32 (!%p1728_p7), %v2461_v2, %v425_v11  ;;  %v428_v18 = vld [vmem:[%s2444_s8 + $0x38] sm:$0xff] (!%p1728_p7)  ;;  %v427_v19 = vld [vmem:[%s2444_s8 + $0x30] sm:$0xff] (!%p1728_p7)  ;;  %vm2182_vm4 = vmmov (!%p1728_p7), 0  }
  0x86   : > { %v499_v12 = vsel (!%p1728_p7), %vm492_vm0, %v462_v4, 0.0  ;;  %v493_v13 = vsel (!%p1728_p7), %vm492_vm0, %v460_v5, 0.0  ;;  %v465_v16 = vmul.f32 (!%p1728_p7), %v2461_v2, %v426_v10  ;;  %v467_v22 = vmul.f32 (!%p1728_p7), %v2461_v2, %v428_v18  ;;  %v430_v24 = vld [vmem:[%s2444_s8 + $0x48] sm:$0xff] (!%p1728_p7)  ;;  %v429_v25 = vld [vmem:[%s2444_s8 + $0x40] sm:$0xff] (!%p1728_p7)  ;;  %v432_v30 = vld [vmem:[%s2444_s8 + $0x58] sm:$0xff] (!%p1728_p7) }
  0x87   : > { %500 = vadd.xlane.f32.xlu1 (!%p1728_p7), %v499_v12  ;;  %494 = vadd.xlane.f32.xlu0 (!%p1728_p7), %v493_v13  ;;  %v502_v14 = vsel (!%p1728_p7), %vm492_vm0, %v463_v8, 0.0  ;;  %v496_v15 = vsel (!%p1728_p7), %vm492_vm0, %v461_v9, 0.0  ;;  %v505_v21 = vsel (!%p1728_p7), %vm492_vm0, %v464_v17, 0.0  ;;  %v466_v23 = vmul.f32 (!%p1728_p7), %v2461_v2, %v427_v19  ;;  %v431_v31 = vld [vmem:[%s2444_s8 + $0x50] sm:$0xff] (!%p1728_p7)  ;;  %v434_v36 = vld [vmem:[%s2444_s8 + $0x68] sm:$0xff] (!%p1728_p7)  ;;  %v433_v37 = vld [vmem:[%s2444_s8 + $0x60] sm:$0xff] (!%p1728_p7) }
  0x88   : > { %v508_v20 = vsel (!%p1728_p7), %vm492_vm0, %v465_v16, 0.0  ;;  %v514_v26 = vsel (!%p1728_p7), %vm492_vm0, %v467_v22, 0.0  ;;  %v469_v28 = vmul.f32 (!%p1728_p7), %v2461_v2, %v430_v24  ;;  %v468_v29 = vmul.f32 (!%p1728_p7), %v2461_v2, %v429_v25  ;;  %v436_v42 = vld [vmem:[%s2444_s8 + $0x78] sm:$0xff] (!%p1728_p7)  ;;  %v435_v43 = vld [vmem:[%s2444_s8 + $0x70] sm:$0xff] (!%p1728_p7)  ;;  %v438_v48 = vld [vmem:[%s2444_s8 + $0x88] sm:$0xff] (!%p1728_p7) }
  0x89   : > { %v511_v27 = vsel (!%p1728_p7), %vm492_vm0, %v466_v23, 0.0  ;;  %v471_v34 = vmul.f32 (!%p1728_p7), %v2461_v2, %v432_v30  ;;  %v470_v35 = vmul.f32 (!%p1728_p7), %v2461_v2, %v431_v31  ;;  %v473_v40 = vmul.f32 (!%p1728_p7), %v2461_v2, %v434_v36  ;;  %v437_v49 = vld [vmem:[%s2444_s8 + $0x80] sm:$0xff] (!%p1728_p7)  ;;  %v440_v54 = vld [vmem:[%s2444_s8 + $0x98] sm:$0xff] (!%p1728_p7)  ;;  %v439_v55 = vld [vmem:[%s2444_s8 + $0x90] sm:$0xff] (!%p1728_p7) }
  0x8a   : > { %v520_v32 = vsel (!%p1728_p7), %vm492_vm0, %v469_v28, 0.0  ;;  %v517_v33 = vsel (!%p1728_p7), %vm492_vm0, %v468_v29, 0.0  ;;  %v472_v41 = vmul.f32 (!%p1728_p7), %v2461_v2, %v433_v37  ;;  %v475_v46 = vmul.f32 (!%p1728_p7), %v2461_v2, %v436_v42  ;;  %v442_v60 = vld [vmem:[%s2444_s8 + $0xa8] sm:$0xff] (!%p1728_p7)  ;;  %v441_v61 = vld [vmem:[%s2444_s8 + $0xa0] sm:$0xff] (!%p1728_p7)  ;;  %v444_v3 = vld [vmem:[%s2444_s8 + $0xb8] sm:$0xff] (!%p1728_p7) }
  0x8b   : > { %503 = vadd.xlane.f32.xlu1 %v502_v14  ;;  %497 = vadd.xlane.f32.xlu0 %v496_v15  ;;  %v526_v38 = vsel %vm492_vm0, %v471_v34, 0.0  ;;  %v523_v39 = vsel %vm492_vm0, %v470_v35, 0.0  ;;  %v532_v44 = vsel %vm492_vm0, %v473_v40, 0.0  ;;  %v474_v47 = vmul.f32 %v2461_v2, %v435_v43  ;;  %v443_v4 = vld [vmem:[%s2444_s8 + $0xb0] sm:$0xff]  ;;  %v446_v9 = vld [vmem:[%s2444_s8 + $0xc8] sm:$0xff]  ;;  %v445_v10 = vld [vmem:[%s2444_s8 + $0xc0] sm:$0xff] }
  0x8c   : > { %v529_v45 = vsel %vm492_vm0, %v472_v41, 0.0  ;;  %v538_v50 = vsel %vm492_vm0, %v475_v46, 0.0  ;;  %v477_v52 = vmul.f32 %v2461_v2, %v438_v48  ;;  %v476_v53 = vmul.f32 %v2461_v2, %v437_v49  ;;  %v448_v15 = vld [vmem:[%s2444_s8 + $0xd8] sm:$0xff]  ;;  %v447_v16 = vld [vmem:[%s2444_s8 + $0xd0] sm:$0xff]  ;;  %v449_v22 = vld [vmem:[%s2444_s8 + $0xe0] sm:$0xff] }
  0x8d   : > { %v535_v51 = vsel %vm492_vm0, %v474_v47, 0.0  ;;  %v479_v58 = vmul.f32 %v2461_v2, %v440_v54  ;;  %v478_v59 = vmul.f32 %v2461_v2, %v439_v55  ;;  %v481_v0 = vmul.f32 %v2461_v2, %v442_v60  ;;  %v451_v28 = vld [vmem:[%s2444_s8 + $0xf0] sm:$0xff] }
  0x8e   : > { %v544_v56 = vsel %vm492_vm0, %v477_v52, 0.0  ;;  %v541_v57 = vsel %vm492_vm0, %v476_v53, 0.0  ;;  %v480_v1 = vmul.f32 %v2461_v2, %v441_v61  ;;  %v483_v7 = vmul.f32 %v2461_v2, %v444_v3 }
  0x8f   : > { %509 = vadd.xlane.f32.xlu1 %v508_v20  ;;  %506 = vadd.xlane.f32.xlu0 %v505_v21  ;;  %v550_v62 = vsel %vm492_vm0, %v479_v58, 0.0  ;;  %v547_v63 = vsel %vm492_vm0, %v478_v59, 0.0  ;;  %v556_v5 = vsel %vm492_vm0, %v481_v0, 0.0  ;;  %v482_v8 = vmul.f32 %v2461_v2, %v443_v4  ;;  %v450_v21 = vld [vmem:[%s2444_s8 + $0xe8] sm:$0xff] }
  0x90   : > { %v553_v6 = vsel %vm492_vm0, %v480_v1, 0.0  ;;  %v562_v11 = vsel %vm492_vm0, %v483_v7, 0.0  ;;  %v485_v13 = vmul.f32 %v2461_v2, %v446_v9  ;;  %v484_v14 = vmul.f32 %v2461_v2, %v445_v10 }
  0x91   : > { %v559_v12 = vsel %vm492_vm0, %v482_v8, 0.0  ;;  %v487_v19 = vmul.f32 %v2461_v2, %v448_v15  ;;  %v486_v20 = vmul.f32 %v2461_v2, %v447_v16  ;;  %v489_v25 = vmul.f32 %v2461_v2, %v450_v21 }
  0x92   : > { %v568_v17 = vsel %vm492_vm0, %v485_v13, 0.0  ;;  %v565_v18 = vsel %vm492_vm0, %v484_v14, 0.0  ;;  %v2178_v35 = vmov -1e+30   ;;  %v2179_v36 = vmov 0.0  }
  0x93   : > { %515 = vadd.xlane.f32.xlu1 %v514_v26  ;;  %512 = vadd.xlane.f32.xlu0 %v511_v27  ;;  %v574_v23 = vsel %vm492_vm0, %v487_v19, 0.0  ;;  %v571_v24 = vsel %vm492_vm0, %v486_v20, 0.0  ;;  %v488_v26 = vmul.f32 %v2461_v2, %v449_v22  ;;  %v452_v27 = vld [vmem:[%s2444_s8 + $0xf8] sm:$0xff]  ;;  %v580_v29 = vsel %vm492_vm0, %v489_v25, 0.0  ;;  %417 = vst.msk [vmem:[#allocation2] sm:$0x1] %vm416_vm1, %v2178_v35 }
  0x94   : > { %v491_v31 = vmul.f32 %v2461_v2, %v452_v27  ;;  %418 = vst.msk [vmem:[#allocation3] sm:$0x1] %vm416_vm1, %v2179_v36  ;;  %1760 = vmatprep.subr.mxu1 %v2179_v36  ;;  %v2180_v42 = vmov 0   ;;  %1757 = vmatprep.mubr.msk.f32.mxu0 %vm2182_vm4, %v2179_v36  ;;  %vm1380_vm5 = vcmask 57344   ;;  %vm1402_vm6 = vcmask 64512  }
  0x95   : > { %v577_v30 = vsel %vm492_vm0, %v488_v26, 0.0  ;;  %1880 = vset.pattern.permute.xlu1 %v2180_v42  ;;  %1879 = vset.pattern.permute.xlu0 %v2180_v42  ;;  %420 = vst.msk [vmem:[#allocation4] sm:$0x1] %vm419_vm3, %v2179_v36 }
  0x96   : > { %1762 = vmatprep.mubr.msk.f32.mxu1 %vm2182_vm4, %v2179_v36  ;;  %v1953_v36 = vld [vmem:[%s2444_s8 + $0x10] sm:$0xff] }
  0x97   : > { %521 = vadd.xlane.f32.xlu1 %v520_v32  ;;  %518 = vadd.xlane.f32.xlu0 %v517_v33  ;;  %v490_v32 = vmul.f32 %v2461_v2, %v451_v28  ;;  %v586_v33 = vsel %vm492_vm0, %v491_v31, 0.0 }
  0x99   : > { %v583_v34 = vsel %vm492_vm0, %v490_v32, 0.0 }
  0x9b   : > { %527 = vadd.xlane.f32.xlu1 %v526_v38  ;;  %524 = vadd.xlane.f32.xlu0 %v523_v39 }
  0x9f   : > { %533 = vadd.xlane.f32.xlu1 %v532_v44  ;;  %530 = vadd.xlane.f32.xlu0 %v529_v45 }
  0xa3   : > { %539 = vadd.xlane.f32.xlu1 %v538_v50  ;;  %536 = vadd.xlane.f32.xlu0 %v535_v51 }
  0xa7   : > { %545 = vadd.xlane.f32.xlu1 %v544_v56  ;;  %542 = vadd.xlane.f32.xlu0 %v541_v57  ;;  %v2562_v57 = vld [vmem:[#allocation6] ss:$0 sm:$0xff] }
  0xab   : > { %551 = vadd.xlane.f32.xlu1 %v550_v62  ;;  %548 = vadd.xlane.f32.xlu0 %v547_v63 }
  0xaf   : > { %557 = vadd.xlane.f32.xlu1 %v556_v5  ;;  %554 = vadd.xlane.f32.xlu0 %v553_v6 }
  0xb3   : > { %563 = vadd.xlane.f32.xlu1 %v562_v11  ;;  %560 = vadd.xlane.f32.xlu0 %v559_v12 }
  0xb7   : > { %569 = vadd.xlane.f32.xlu1 %v568_v17  ;;  %566 = vadd.xlane.f32.xlu0 %v565_v18 }
  0xbb   : > { %575 = vadd.xlane.f32.xlu1 %v574_v23  ;;  %572 = vadd.xlane.f32.xlu0 %v571_v24 }
  0xbf   : > { %581 = vadd.xlane.f32.xlu1 %v580_v29  ;;  %578 = vadd.xlane.f32.xlu0 %v577_v30 }
  0xc3   : > { %587 = vadd.xlane.f32.xlu1 %v586_v33  ;;  %584 = vadd.xlane.f32.xlu0 %v583_v34 }
 0x114   : > { %v501_v37 = vpop.xlane.xlu1 %500  ;;  %v495_v2 = vpop.xlane.xlu0 %494 }
 0x115   : > { %v2571_v60 = vadd.f32 %v2562_v57, %v495_v2  ;;  %v2589_v5 = vadd.f32 %v2562_v57, %v501_v37 }
 0x117   : > { %v761_v11 = vsel %vm760_vm2, %v2571_v60, -inf  ;;  %v763_v21 = vsel %vm760_vm2, %v2589_v5, -inf }
 0x118   : > { %v504_v38 = vpop.xlane.xlu1 %503  ;;  %v498_v39 = vpop.xlane.xlu0 %497 }
 0x119   : > { %v2574_v61 = vadd.f32 %v2562_v57, %v498_v39  ;;  %v2592_v6 = vadd.f32 %v2562_v57, %v504_v38 }
 0x11b   : > { %v762_v12 = vsel %vm760_vm2, %v2574_v61, -inf  ;;  %v764_v22 = vsel %vm760_vm2, %v2592_v6, -inf }
 0x11c   : > { %v510_v40 = vpop.xlane.xlu1 %509  ;;  %v507_v41 = vpop.xlane.xlu0 %506 }
 0x11d   : > { %v2565_v58 = vadd.f32 %v2562_v57, %v510_v40  ;;  %v2568_v59 = vadd.f32 %v2562_v57, %v507_v41 }
 0x11f   : > { %v767_v7 = vsel %vm760_vm2, %v2565_v58, -inf  ;;  %v765_v8 = vsel %vm760_vm2, %v2568_v59, -inf }
 0x120   : > { %v516_v43 = vpop.xlane.xlu1 %515  ;;  %v513_v44 = vpop.xlane.xlu0 %512  ;;  %v768_v23 = vmax.f32 %v762_v12, %v767_v7  ;;  %v766_v24 = vmax.f32 %v761_v11, %v765_v8 }
 0x121   : > { %v2577_v62 = vadd.f32 %v2562_v57, %v516_v43  ;;  %v2580_v63 = vadd.f32 %v2562_v57, %v513_v44 }
 0x123   : > { %v771_v13 = vsel %vm760_vm2, %v2577_v62, -inf  ;;  %v769_v14 = vsel %vm760_vm2, %v2580_v63, -inf }
 0x124   : > { %v522_v45 = vpop.xlane.xlu1 %521  ;;  %v519_v46 = vpop.xlane.xlu0 %518  ;;  %v772_v29 = vmax.f32 %v764_v22, %v771_v13  ;;  %v770_v30 = vmax.f32 %v763_v21, %v769_v14 }
 0x125   : > { %v2583_v3 = vadd.f32 %v2562_v57, %v522_v45  ;;  %v2586_v4 = vadd.f32 %v2562_v57, %v519_v46 }
 0x127   : > { %v775_v17 = vsel %vm760_vm2, %v2583_v3, -inf  ;;  %v773_v18 = vsel %vm760_vm2, %v2586_v4, -inf }
 0x128   : > { %v528_v47 = vpop.xlane.xlu1 %527  ;;  %v525_v48 = vpop.xlane.xlu0 %524  ;;  %v776_v31 = vmax.f32 %v768_v23, %v775_v17  ;;  %v774_v32 = vmax.f32 %v766_v24, %v773_v18 }
 0x129   : > { %v2599_v9 = vadd.f32 %v2562_v57, %v528_v47  ;;  %v2602_v10 = vadd.f32 %v2562_v57, %v525_v48 }
 0x12b   : > { %v779_v25 = vsel %vm760_vm2, %v2599_v9, -inf  ;;  %v777_v26 = vsel %vm760_vm2, %v2602_v10, -inf }
 0x12c   : > { %v534_v49 = vpop.xlane.xlu1 %533  ;;  %v531_v50 = vpop.xlane.xlu0 %530  ;;  %v780_v39 = vmax.f32 %v772_v29, %v779_v25  ;;  %v778_v40 = vmax.f32 %v770_v30, %v777_v26 }
 0x12d   : > { %v2617_v19 = vadd.f32 %v2562_v57, %v534_v49  ;;  %v2620_v20 = vadd.f32 %v2562_v57, %v531_v50 }
 0x12f   : > { %v783_v35 = vsel %vm760_vm2, %v2617_v19, -inf  ;;  %v781_v37 = vsel %vm760_vm2, %v2620_v20, -inf }
 0x130   : > { %v540_v51 = vpop.xlane.xlu1 %539  ;;  %v537_v52 = vpop.xlane.xlu0 %536  ;;  %v784_v47 = vmax.f32 %v776_v31, %v783_v35  ;;  %v782_v48 = vmax.f32 %v774_v32, %v781_v37 }
 0x131   : > { %v2631_v27 = vadd.f32 %v2562_v57, %v540_v51  ;;  %v2634_v28 = vadd.f32 %v2562_v57, %v537_v52 }
 0x133   : > { %v787_v43 = vsel %vm760_vm2, %v2631_v27, -inf  ;;  %v785_v44 = vsel %vm760_vm2, %v2634_v28, -inf }
 0x134   : > { %v546_v53 = vpop.xlane.xlu1 %545  ;;  %v543_v54 = vpop.xlane.xlu0 %542 }
 0x135   : > { %v2641_v2 = vadd.f32 %v2562_v57, %v546_v53  ;;  %v2644_v38 = vadd.f32 %v2562_v57, %v543_v54 }
 0x137   : > { %v791_v53 = vsel %vm760_vm2, %v2641_v2, -inf  ;;  %v789_v54 = vsel %vm760_vm2, %v2644_v38, -inf }
 0x138   : > { %v552_v55 = vpop.xlane.xlu1 %551  ;;  %v549_v56 = vpop.xlane.xlu0 %548 }
 0x139   : > { %v2647_v41 = vadd.f32 %v2562_v57, %v552_v55  ;;  %v2650_v42 = vadd.f32 %v2562_v57, %v549_v56 }
 0x13b   : > { %v795_v7 = vsel %vm760_vm2, %v2647_v41, -inf  ;;  %v793_v8 = vsel %vm760_vm2, %v2650_v42, -inf }
 0x13c   : > { %v558_v0 = vpop.xlane.xlu1 %557  ;;  %v555_v1 = vpop.xlane.xlu0 %554 }
 0x13d   : > { %v2657_v45 = vadd.f32 %v2562_v57, %v558_v0  ;;  %v2660_v46 = vadd.f32 %v2562_v57, %v555_v1  ;;  %v788_v0 = vmax.f32 %v780_v39, %v787_v43  ;;  %v786_v1 = vmax.f32 %v778_v40, %v785_v44 }
 0x13f   : > { %v799_v11 = vsel %vm760_vm2, %v2657_v45, -inf  ;;  %v797_v12 = vsel %vm760_vm2, %v2660_v46, -inf  ;;  %v796_v29 = vmax.f32 %v788_v0, %v795_v7  ;;  %v794_v30 = vmax.f32 %v786_v1, %v793_v8 }
 0x140   : > { %v564_v15 = vpop.xlane.xlu1 %563  ;;  %v561_v16 = vpop.xlane.xlu0 %560 }
 0x141   : > { %v2663_v49 = vadd.f32 %v2562_v57, %v564_v15  ;;  %v2666_v50 = vadd.f32 %v2562_v57, %v561_v16  ;;  %v792_v15 = vmax.f32 %v784_v47, %v791_v53  ;;  %v790_v16 = vmax.f32 %v782_v48, %v789_v54 }
 0x143   : > { %v803_v17 = vsel %vm760_vm2, %v2663_v49, -inf  ;;  %v801_v18 = vsel %vm760_vm2, %v2666_v50, -inf  ;;  %v800_v31 = vmax.f32 %v792_v15, %v799_v11  ;;  %v798_v32 = vmax.f32 %v790_v16, %v797_v12 }
 0x144   : > { %v570_v33 = vpop.xlane.xlu1 %569  ;;  %v567_v34 = vpop.xlane.xlu0 %566  ;;  %v804_v39 = vmax.f32 %v796_v29, %v803_v17  ;;  %v802_v40 = vmax.f32 %v794_v30, %v801_v18  ;;  %v2724_v30 = vld [vmem:[#allocation2] sm:$0x1] }
 0x145   : > { %v2673_v55 = vadd.f32 %v2562_v57, %v570_v33  ;;  %v2676_v56 = vadd.f32 %v2562_v57, %v567_v34 }
 0x147   : > { %v807_v23 = vsel %vm760_vm2, %v2673_v55, -inf  ;;  %v805_v24 = vsel %vm760_vm2, %v2676_v56, -inf }
 0x148   : > { %v576_v51 = vpop.xlane.xlu1 %575  ;;  %v573_v52 = vpop.xlane.xlu0 %572  ;;  %v808_v43 = vmax.f32 %v800_v31, %v807_v23  ;;  %v806_v44 = vmax.f32 %v798_v32, %v805_v24 }
 0x149   : > { %v2687_v13 = vadd.f32 %v2562_v57, %v576_v51  ;;  %v2690_v14 = vadd.f32 %v2562_v57, %v573_v52 }
 0x14b   : > { %v811_v33 = vsel %vm760_vm2, %v2687_v13, -inf  ;;  %v809_v34 = vsel %vm760_vm2, %v2690_v14, -inf }
 0x14c   : > { %v582_v21 = vpop.xlane.xlu1 %581  ;;  %v579_v22 = vpop.xlane.xlu0 %578  ;;  %v812_v53 = vmax.f32 %v804_v39, %v811_v33  ;;  %v810_v54 = vmax.f32 %v802_v40, %v809_v34 }
 0x14d   : > { %v2701_v25 = vadd.f32 %v2562_v57, %v582_v21  ;;  %v2704_v26 = vadd.f32 %v2562_v57, %v579_v22  ;;  %v835_v22 = vlaneseq }
 0x14f   : > { %v815_v35 = vsel %vm760_vm2, %v2701_v25, -inf  ;;  %v813_v37 = vsel %vm760_vm2, %v2704_v26, -inf  ;;  %v836_v24 = vshrl.u32 %v835_v22, 7 }
 0x150   : > { %v588_v47 = vpop.xlane.xlu1 %587  ;;  %v585_v48 = vpop.xlane.xlu0 %584  ;;  %v816_v0 = vmax.f32 %v808_v43, %v815_v35  ;;  %v814_v1 = vmax.f32 %v806_v44, %v813_v37 }
 0x151   : > { %v2715_v51 = vadd.f32 %v2562_v57, %v588_v47  ;;  %v2718_v52 = vadd.f32 %v2562_v57, %v585_v48  ;;  %v2726_v32 = vsub.s32 0, %v836_v24 }
 0x152   : > { %v821_v15 = vmax.f32 %v814_v1, %v816_v0 }
 0x153   : > { %v819_v7 = vsel %vm760_vm2, %v2715_v51, -inf  ;;  %v817_v8 = vsel %vm760_vm2, %v2718_v52, -inf }
 0x154   : > { %v820_v11 = vmax.f32 %v812_v53, %v819_v7  ;;  %v818_v12 = vmax.f32 %v810_v54, %v817_v8 }
 0x156   : > { %v822_v16 = vmax.f32 %v818_v12, %v820_v11 }
 0x158   : > { %v823_v17 = vmax.f32 %v821_v15, %v822_v16 }
 0x15a   : > { %v824_v18 = vrot.slane %v823_v17, 4 }
 0x15c   : > { %v825_v21 = vmax.f32 %v823_v17, %v824_v18 }
 0x15e   : > { %v826_v57 = vrot.slane %v825_v21, 2 }
 0x160   : > { %v827_v23 = vmax.f32 %v825_v21, %v826_v57 }
 0x162   : > { %v828_v29 = vrot.slane %v827_v23, 1 }
 0x164   : > { %v829_v31 = vmax.f32 %v827_v23, %v828_v29 }
 0x166   : > { %v2729_v33 = vmax.f32 %v2724_v30, %v829_v31 }
 0x168   : > { %v831_v34 = vsub.f32 %v2724_v30, %v2729_v33  ;;  %1285 = vst.msk [vmem:[#allocation2] sm:$0x1] %vm416_vm1, %v2729_v33  ;;  %v2737_v35 = vrot.slane %v2729_v33, %v2726_v32  ;;  %v936_v33 = vld [vmem:[#allocation3] sm:$0x1] }
 0x16a   : > { %v840_v37 = vsub.f32 %v2571_v60, %v2737_v35  ;;  %v841_v39 = vsub.f32 %v2574_v61, %v2737_v35  ;;  %v842_v40 = vsub.f32 %v2589_v5, %v2737_v35  ;;  %v843_v43 = vsub.f32 %v2592_v6, %v2737_v35 }
 0x16b   : > { %v844_v44 = vsub.f32 %v2568_v59, %v2737_v35  ;;  %v845_v53 = vsub.f32 %v2565_v58, %v2737_v35  ;;  %v846_v60 = vsub.f32 %v2580_v63, %v2737_v35  ;;  %v849_v61 = vsub.f32 %v2583_v3, %v2737_v35 }
 0x16c   : > { %v872_v47 = vmul.f32 1.442695, %v840_v37  ;;  %v874_v48 = vmul.f32 1.442695, %v841_v39  ;;  %v876_v54 = vmul.f32 1.442695, %v842_v40  ;;  %v847_v59 = vsub.f32 %v2577_v62, %v2737_v35 }
 0x16d   : > { %v878_v0 = vmul.f32 1.442695, %v843_v43  ;;  %v880_v5 = vmul.f32 1.442695, %v844_v44  ;;  %v882_v6 = vmul.f32 1.442695, %v845_v53  ;;  %v848_v58 = vsub.f32 %v2586_v4, %v2737_v35 }
 0x16e   : > { %1881 = vpow2.f32 %v872_v47  ;;  %v884_v1 = vmul.f32 1.442695, %v846_v60  ;;  %v851_v7 = vsub.f32 %v2599_v9, %v2737_v35  ;;  %v890_v63 = vmul.f32 1.442695, %v849_v61 }
 0x16f   : > { %1883 = vpow2.f32 %v874_v48  ;;  %v886_v8 = vmul.f32 1.442695, %v847_v59  ;;  %v850_v3 = vsub.f32 %v2602_v10, %v2737_v35  ;;  %v888_v11 = vmul.f32 1.442695, %v848_v58 }
 0x170   : > { %1885 = vpow2.f32 %v876_v54  ;;  %v853_v62 = vsub.f32 %v2617_v19, %v2737_v35  ;;  %v894_v12 = vmul.f32 1.442695, %v851_v7  ;;  %v852_v17 = vsub.f32 %v2620_v20, %v2737_v35 }
 0x171   : > { %1887 = vpow2.f32 %v878_v0  ;;  %v892_v18 = vmul.f32 1.442695, %v850_v3  ;;  %v855_v19 = vsub.f32 %v2631_v27, %v2737_v35  ;;  %v854_v31 = vsub.f32 %v2634_v28, %v2737_v35 }
 0x172   : > { %1889 = vpow2.f32 %v880_v5  ;;  %v898_v22 = vmul.f32 1.442695, %v853_v62  ;;  %v896_v20 = vmul.f32 1.442695, %v852_v17  ;;  %v857_v40 = vsub.f32 %v2641_v2, %v2737_v35 }
 0x173   : > { %1891 = vpow2.f32 %v882_v6  ;;  %v902_v27 = vmul.f32 1.442695, %v855_v19  ;;  %v856_v28 = vsub.f32 %v2644_v38, %v2737_v35  ;;  %v900_v54 = vmul.f32 1.442695, %v854_v31 }
 0x174   : > { %1893 = vpow2.f32 %v884_v1  ;;  %v859_v2 = vsub.f32 %v2647_v41, %v2737_v35  ;;  %v906_v61 = vmul.f32 1.442695, %v857_v40  ;;  %v858_v38 = vsub.f32 %v2650_v42, %v2737_v35 }
 0x175   : > { %1895 = vpow2.f32 %v890_v63  ;;  %v904_v7 = vmul.f32 1.442695, %v856_v28  ;;  %v861_v41 = vsub.f32 %v2657_v45, %v2737_v35  ;;  %v860_v42 = vsub.f32 %v2660_v46, %v2737_v35 }
 0x176   : > { %1897 = vpow2.f32 %v886_v8  ;;  %v910_v8 = vmul.f32 1.442695, %v859_v2  ;;  %v863_v45 = vsub.f32 %v2663_v49, %v2737_v35  ;;  %v862_v46 = vsub.f32 %v2666_v50, %v2737_v35 }
 0x177   : > { %1899 = vpow2.f32 %v888_v11  ;;  %v865_v49 = vsub.f32 %v2673_v55, %v2737_v35  ;;  %v864_v50 = vsub.f32 %v2676_v56, %v2737_v35  ;;  %v867_v55 = vsub.f32 %v2687_v13, %v2737_v35 }
 0x178   : > { %v1882_v15 = vpop.eup %1881  ;;  %1901 = vpow2.f32 %v894_v12  ;;  %v866_v56 = vsub.f32 %v2690_v14, %v2737_v35  ;;  %v869_v13 = vsub.f32 %v2701_v25, %v2737_v35  ;;  %v868_v14 = vsub.f32 %v2704_v26, %v2737_v35 }
 0x179   : > { %v1884_v4 = vpop.eup %1883  ;;  %v938_v16 = vsel %vm760_vm2, %v1882_v15, 0.0  ;;  %1023 = vperm.xlu0 %1879, %v1882_v15   ;;  %1903 = vpow2.f32 %v892_v18  ;;  %v920_v28 = vmul.f32 1.442695, %v864_v50  ;;  %v871_v25 = vsub.f32 %v2715_v51, %v2737_v35 }
 0x17a   : > { %v1886_v9 = vpop.eup %1885  ;;  %v939_v10 = vsel %vm760_vm2, %v1884_v4, 0.0  ;;  %1028 = vperm.xlu1 %1880, %v1884_v4   ;;  %1905 = vpow2.f32 %v898_v22  ;;  %v908_v4 = vmul.f32 1.442695, %v858_v38  ;;  %v912_v22 = vmul.f32 1.442695, %v860_v42 }
 0x17b   : > { %v1888_v21 = vpop.eup %1887  ;;  %v940_v57 = vadd.f32 %v939_v10, %v938_v16  ;;  %v941_v23 = vsel %vm760_vm2, %v1886_v9, 0.0  ;;  %1907 = vpow2.f32 %v896_v20  ;;  %v928_v26 = vmul.f32 1.442695, %v868_v14  ;;  %v1303_v14 = vld [vmem:[%s3140_s3 + $0x8] sm:$0xff] }
 0x17c   : > { %v1890_v24 = vpop.eup %1889  ;;  %v943_v37 = vsel %vm760_vm2, %v1888_v21, 0.0  ;;  %1909 = vpow2.f32 %v902_v27  ;;  %v922_v27 = vmul.f32 1.442695, %v865_v49  ;;  %v934_v51 = vmul.f32 1.442695, %v871_v25 }
 0x17d   : > { %v942_v29 = vadd.f32 %v941_v23, %v940_v57  ;;  %v1892_v39 = vpop.eup %1891  ;;  %v945_v47 = vsel %vm760_vm2, %v1890_v24, 0.0  ;;  %1911 = vpow2.f32 %v900_v54  ;;  %v918_v23 = vmul.f32 1.442695, %v863_v45 }
 0x17e   : > { %1033 = vperm.xlu1 %1880, %v1886_v9   ;;  %v1894_v44 = vpop.eup %1893  ;;  %v947_v0 = vsel %vm760_vm2, %v1892_v39, 0.0  ;;  %1913 = vpow2.f32 %v906_v61  ;;  %v914_v9 = vmul.f32 1.442695, %v861_v41 }
 0x17f   : > { %v944_v43 = vadd.f32 %v943_v37, %v942_v29  ;;  %v1896_v48 = vpop.eup %1895  ;;  %v949_v6 = vsel %vm760_vm2, %v1894_v44, 0.0  ;;  %1915 = vpow2.f32 %v904_v7 }
 0x180   : > { %1068 = vperm.xlu0 %1879, %v1896_v48   ;;  %v1898_v60 = vpop.eup %1897  ;;  %v955_v16 = vsel %vm760_vm2, %v1896_v48, 0.0  ;;  %1917 = vpow2.f32 %v910_v8 }
 0x181   : > { %v946_v53 = vadd.f32 %v945_v47, %v944_v43  ;;  %v2783_v59 = vpop.eup %1899  ;;  %v951_v63 = vsel %vm760_vm2, %v1898_v60, 0.0  ;;  %1919 = vpow2.f32 %v908_v4 }
 0x182   : > { %1038 = vperm.xlu1 %1880, %v1888_v21   ;;  %v1902_v58 = vpop.eup %1901  ;;  %v953_v62 = vsel %vm760_vm2, %v2783_v59, 0.0  ;;  %1921 = vpow2.f32 %v914_v9 }
 0x183   : > { %v948_v5 = vadd.f32 %v947_v0, %v946_v53  ;;  %v2791_v11 = vpop.eup %1903  ;;  %v959_v57 = vsel %vm760_vm2, %v1902_v58, 0.0  ;;  %1923 = vpow2.f32 %v912_v22  ;;  %v926_v0 = vmul.f32 1.442695, %v867_v55 }
 0x184   : > { %1078 = vperm.xlu0 %1879, %v1902_v58   ;;  %v1906_v12 = vpop.eup %1905  ;;  %v957_v10 = vsel %vm760_vm2, %v2791_v11, 0.0  ;;  %1925 = vpow2.f32 %v918_v23  ;;  %v924_v58 = vmul.f32 1.442695, %v866_v56 }
 0x185   : > { %v950_v1 = vadd.f32 %v949_v6, %v948_v5  ;;  %v2800_v18 = vpop.eup %1907  ;;  %v963_v40 = vsel %vm760_vm2, %v1906_v12, 0.0 }
 0x186   : > { %1043 = vperm.xlu1 %1880, %v1890_v24   ;;  %v1910_v21 = vpop.eup %1909  ;;  %v961_v31 = vsel %vm760_vm2, %v2800_v18, 0.0 }
 0x187   : > { %v952_v3 = vadd.f32 %v951_v63, %v950_v1  ;;  %v1912_v29 = vpop.eup %1911  ;;  %v967_v54 = vsel %vm760_vm2, %v1910_v21, 0.0 }
 0x188   : > { %1088 = vperm.xlu0 %1879, %v1906_v12   ;;  %v1914_v20 = vpop.eup %1913  ;;  %v965_v47 = vsel %vm760_vm2, %v1912_v29, 0.0 }
 0x189   : > { %v954_v15 = vadd.f32 %v953_v62, %v952_v3  ;;  %v971_v1 = vsel %vm760_vm2, %v1914_v20, 0.0 }
 0x18a   : > { %1048 = vperm.xlu1 %1880, %v1892_v39   ;;  %v916_v39 = vmul.f32 1.442695, %v862_v46 }
 0x18b   : > { %v956_v17 = vadd.f32 %v955_v16, %v954_v15 }
 0x18c   : > { %1098 = vperm.xlu0 %1879, %v1910_v21   ;;  %1927 = vpow2.f32 %v916_v39 }
 0x18d   : > { %v958_v19 = vadd.f32 %v957_v10, %v956_v17  ;;  %1929 = vpow2.f32 %v922_v27  ;;  %v832_v27 = vmul.f32 1.442695, %v831_v34 }
 0x18e   : > { %1053 = vperm.xlu1 %1880, %v1894_v44   ;;  %v1916_v44 = vpop.eup %1915  ;;  %1931 = vpow2.f32 %v920_v28 }
 0x18f   : > { %v960_v24 = vadd.f32 %v959_v57, %v958_v19  ;;  %v1918_v48 = vpop.eup %1917  ;;  %v969_v61 = vsel %vm760_vm2, %v1916_v44, 0.0  ;;  %1933 = vpow2.f32 %v926_v0 }
 0x190   : > { %1108 = vperm.xlu0 %1879, %v1914_v20   ;;  %v1920_v2 = vpop.eup %1919  ;;  %1935 = vpow2.f32 %v924_v58  ;;  %v975_v3 = vsel %vm760_vm2, %v1918_v48, 0.0  ;;  %v1304_v58 = vld [vmem:[%s3140_s3 + $0x10] sm:$0xff] }
 0x191   : > { %v962_v37 = vadd.f32 %v961_v31, %v960_v24  ;;  %v1922_v5 = vpop.eup %1921  ;;  %v973_v63 = vsel %vm760_vm2, %v1920_v2, 0.0 }
 0x192   : > { %1058 = vperm.xlu1 %1880, %v1898_v60   ;;  %v1924_v7 = vpop.eup %1923  ;;  %v979_v16 = vsel %vm760_vm2, %v1922_v5, 0.0 }
 0x193   : > { %v964_v43 = vadd.f32 %v963_v40, %v962_v37  ;;  %v1926_v41 = vpop.eup %1925  ;;  %v977_v15 = vsel %vm760_vm2, %v1924_v7, 0.0 }
 0x194   : > { %1118 = vperm.xlu0 %1879, %v1918_v48   ;;  %v983_v10 = vsel %vm760_vm2, %v1926_v41, 0.0 }
 0x195   : > { %v966_v53 = vadd.f32 %v965_v47, %v964_v43 }
 0x196   : > { %1063 = vperm.xlu1 %1880, %v2783_v59   ;;  %v930_v59 = vmul.f32 1.442695, %v869_v13  ;;  %v1928_v12 = vpop.eup %1927 }
 0x197   : > { %v968_v60 = vadd.f32 %v967_v54, %v966_v53  ;;  %v1930_v42 = vpop.eup %1929 }
 0x198   : > { %1128 = vperm.xlu0 %1879, %v1922_v5   ;;  %1937 = vpow2.f32 %v930_v59  ;;  %v1932_v17 = vpop.eup %1931  ;;  %v987_v49 = vsel %vm760_vm2, %v1930_v42, 0.0  ;;  %v1305_v59 = vld [vmem:[%s3140_s3 + $0x18] sm:$0xff] }
 0x199   : > { %v970_v6 = vadd.f32 %v969_v61, %v968_v60  ;;  %1939 = vpow2.f32 %v928_v26  ;;  %v985_v46 = vsel %vm760_vm2, %v1932_v17, 0.0 }
 0x19a   : > { %1073 = vperm.xlu1 %1880, %v2791_v11   ;;  %v870_v11 = vsub.f32 %v2718_v52, %v2737_v35  ;;  %1941 = vpow2.f32 %v934_v51  ;;  %v1934_v52 = vpop.eup %1933  ;;  %v1952_v51 = vld [vmem:[%s2444_s8] sm:$0xff] }
 0x19b   : > { %v972_v38 = vadd.f32 %v971_v1, %v970_v6  ;;  %v1936_v19 = vpop.eup %1935  ;;  %v991_v37 = vsel %vm760_vm2, %v1934_v52, 0.0  ;;  %v1302_v6 = vld [vmem:[%s3140_s3] sm:$0xff]  ;;  %v2181_v1 = vmov 0.0|0.0  }
 0x19c   : > { %1138 = vperm.xlu0 %1879, %v1926_v41   ;;  %v932_v45 = vmul.f32 1.442695, %v870_v11  ;;  %1765 = vmatprep.subr.bf16.mxu0 %v2181_v1  ;;  %v1766_v25 = vpack.c.bf16 %v1303_v14, %v1302_v6 }
 0x19d   : > { %v974_v8 = vadd.f32 %v973_v63, %v972_v38  ;;  %v1769_v38 = vpack.c.bf16 %v1305_v59, %v1304_v58 }
 0x19e   : > { %1083 = vperm.xlu1 %1880, %v2800_v18   ;;  %v981_v18 = vsel %vm760_vm2, %v1928_v12, 0.0  ;;  %1943 = vpow2.f32 %v932_v45  ;;  %1767 = vmatpush3.bf16.msra.mxu0 %v1766_v25  ;;  %v1954_v45 = vld [vmem:[%s2444_s8 + $0x18] sm:$0xff] }
 0x19f   : > { %v976_v62 = vadd.f32 %v975_v3, %v974_v8  ;;  %1945 = vpow2.f32 %v832_v27  ;;  %1768 = vmatprep.subr.bf16.mxu0 %v2181_v1  ;;  %v1951_v3 = vld [vmem:[%s2444_s8 + $0x8] sm:$0xff] }
 0x1a0   : > { %1148 = vperm.xlu0 %1879, %v1930_v42  }
 0x1a1   : > { %v978_v4 = vadd.f32 %v977_v15, %v976_v62 }
 0x1a2   : > { %1093 = vperm.xlu1 %1880, %v1912_v29   ;;  %v1938_v22 = vpop.eup %1937  ;;  %v989_v29 = vsel %vm760_vm2, %v1936_v19, 0.0  ;;  %1770 = vmatpush3.bf16.msra.mxu0 %v1769_v38 }
 0x1a3   : > { %v980_v9 = vadd.f32 %v979_v16, %v978_v4  ;;  %v1940_v24 = vpop.eup %1939  ;;  %v995_v43 = vsel %vm760_vm2, %v1938_v22, 0.0 }
 0x1a4   : > { %1158 = vperm.xlu0 %1879, %v1934_v52   ;;  %v1942_v31 = vpop.eup %1941  ;;  %v993_v39 = vsel %vm760_vm2, %v1940_v24, 0.0 }
 0x1a5   : > { %v982_v35 = vadd.f32 %v981_v18, %v980_v9  ;;  %v999_v53 = vsel %vm760_vm2, %v1942_v31, 0.0 }
 0x1a6   : > { %1103 = vperm.xlu1 %1880, %v1916_v44  }
 0x1a7   : > { %v984_v21 = vadd.f32 %v983_v10, %v982_v35  ;;  %v1955_v35 = vld [vmem:[%s2444_s8 + $0x20] sm:$0xff] }
 0x1a8   : > { %1168 = vperm.xlu0 %1879, %v1938_v22   ;;  %v1944_v40 = vpop.eup %1943 }
 0x1a9   : > { %v986_v57 = vadd.f32 %v985_v46, %v984_v21  ;;  %v997_v47 = vsel %vm760_vm2, %v1944_v40, 0.0  ;;  %v1946_v30 = vpop.eup %1945  ;;  %v1956_v46 = vld [vmem:[%s2444_s8 + $0x28] sm:$0xff] }
 0x1aa   : > { %1113 = vperm.xlu1 %1880, %v1920_v2   ;;  %v937_v60 = vmul.f32 %v1946_v30, %v936_v33 }
 0x1ab   : > { %v988_v23 = vadd.f32 %v987_v49, %v986_v57 }
 0x1ac   : > { %1178 = vperm.xlu0 %1879, %v1942_v31  }
 0x1ad   : > { %v990_v20 = vadd.f32 %v989_v29, %v988_v23 }
 0x1ae   : > { %1123 = vperm.xlu1 %1880, %v1924_v7  }
 0x1af   : > { %v992_v50 = vadd.f32 %v991_v37, %v990_v20 }
 0x1b1   : > { %v994_v55 = vadd.f32 %v993_v39, %v992_v50 }
 0x1b2   : > { %1133 = vperm.xlu1 %1880, %v1928_v12  }
 0x1b3   : > { %v996_v44 = vadd.f32 %v995_v43, %v994_v55  ;;  %v1958_v55 = vld [vmem:[%s2444_s8 + $0x38] sm:$0xff] }
 0x1b5   : > { %v998_v48 = vadd.f32 %v997_v47, %v996_v44 }
 0x1b6   : > { %1143 = vperm.xlu1 %1880, %v1932_v17  }
 0x1b7   : > { %v1000_v56 = vadd.f32 %v999_v53, %v998_v48 }
 0x1b9   : > { %v1001_v28 = vrot.slane %v1000_v56, 4 }
 0x1ba   : > { %1153 = vperm.xlu1 %1880, %v1936_v19  }
 0x1bb   : > { %v1002_v54 = vadd.f32 %v1001_v28, %v1000_v56  ;;  %v1959_v56 = vld [vmem:[%s2444_s8 + $0x48] sm:$0xff] }
 0x1bd   : > { %v1003_v13 = vrot.slane %v1002_v54, 2 }
 0x1be   : > { %1163 = vperm.xlu1 %1880, %v1940_v24   ;;  %v1957_v24 = vld [vmem:[%s2444_s8 + $0x30] sm:$0xff] }
 0x1bf   : > { %v1004_v0 = vadd.f32 %v1003_v13, %v1002_v54  ;;  %v1960_v54 = vld [vmem:[%s2444_s8 + $0x40] sm:$0xff] }
 0x1c1   : > { %v1005_v34 = vrot.slane %v1004_v0, 1 }
 0x1c2   : > { %1173 = vperm.xlu1 %1880, %v1944_v40  }
 0x1c3   : > { %v1006_v2 = vadd.f32 %v1005_v34, %v1004_v0 }
 0x1c5   : > { %v1007_v61 = vadd.f32 %v1006_v2, %v937_v60  ;;  %v1961_v2 = vld [vmem:[%s2444_s8 + $0x58] sm:$0xff] }
 0x1c6   : > { %1013 = vperm.xlu1 %1880, %v1946_v30  }
 0x1c7   : > { %1009 = vst.msk [vmem:[#allocation3] sm:$0x1] %vm416_vm1, %v1007_v61 }
 0x1ce   : > { %v1290_v5 = vld [vmem:[#allocation3] sm:$0x1] }
 0x1cf   : > { %1293 = vperm.xlu0 %1879, %v1290_v5   ;;  %v1962_v5 = vld [vmem:[%s2444_s8 + $0x50] sm:$0xff] }
 0x1f8   : > { %v1024_v63 = vpop.permute.xlu0 %1023 }
 0x1f9   : > { %v1029_v7 = vpop.permute.xlu1 %1028  ;;  %v1181_v62 = vmul.f32 %v1952_v51, %v1024_v63 }
 0x1fa   : > { %v1182_v11 = vmul.f32 %v1951_v3, %v1029_v7  ;;  %v1963_v7 = vld [vmem:[%s2444_s8 + $0x68] sm:$0xff] }
 0x1fb   : > { %v1213_v16 = vsel %vm492_vm0, %v1181_v62, 0.0 }
 0x1fc   : > { %v1214_v4 = vsel %vm492_vm0, %v1182_v11, 0.0 }
 0x1fd   : > { %v1034_v41 = vpop.permute.xlu1 %1033  ;;  %v1215_v21 = vadd.f32 %v1214_v4, %v1213_v16 }
 0x1fe   : > { %v1183_v42 = vmul.f32 %v1953_v36, %v1034_v41  ;;  %v1964_v41 = vld [vmem:[%s2444_s8 + $0x60] sm:$0xff] }
 0x1ff   : > { %v1069_v8 = vpop.permute.xlu0 %1068 }
 0x200   : > { %v1216_v52 = vsel %vm492_vm0, %v1183_v42, 0.0  ;;  %v1190_v28 = vmul.f32 %v1959_v56, %v1069_v8  ;;  %v1966_v42 = vld [vmem:[%s2444_s8 + $0x70] sm:$0xff] }
 0x201   : > { %v1039_v26 = vpop.permute.xlu1 %1038  ;;  %v1217_v57 = vadd.f32 %v1216_v52, %v1215_v21  ;;  %v1967_v52 = vld [vmem:[%s2444_s8 + $0x88] sm:$0xff] }
 0x202   : > { %v1184_v9 = vmul.f32 %v1954_v45, %v1039_v26  ;;  %v1230_v60 = vsel %vm492_vm0, %v1190_v28, 0.0 }
 0x203   : > { %v1079_v12 = vpop.permute.xlu0 %1078 }
 0x204   : > { %v1218_v19 = vsel %vm492_vm0, %v1184_v9, 0.0  ;;  %v1192_v61 = vmul.f32 %v1961_v2, %v1079_v12 }
 0x205   : > { %v1044_v15 = vpop.permute.xlu1 %1043  ;;  %v1219_v31 = vadd.f32 %v1218_v19, %v1217_v57 }
 0x206   : > { %v1185_v10 = vmul.f32 %v1955_v35, %v1044_v15  ;;  %v1234_v38 = vsel %vm492_vm0, %v1192_v61, 0.0  ;;  %v1965_v15 = vld [vmem:[%s2444_s8 + $0x78] sm:$0xff] }
 0x207   : > { %v1089_v17 = vpop.permute.xlu0 %1088 }
 0x208   : > { %v1220_v23 = vsel %vm492_vm0, %v1185_v10, 0.0  ;;  %v1194_v63 = vmul.f32 %v1963_v7, %v1089_v17  ;;  %v1968_v10 = vld [vmem:[%s2444_s8 + $0x80] sm:$0xff] }
 0x209   : > { %v1049_v18 = vpop.permute.xlu1 %1048  ;;  %v1221_v50 = vadd.f32 %v1220_v23, %v1219_v31  ;;  %v1970_v31 = vld [vmem:[%s2444_s8 + $0x90] sm:$0xff] }
 0x20a   : > { %v1186_v22 = vmul.f32 %v1956_v46, %v1049_v18  ;;  %v1238_v12 = vsel %vm492_vm0, %v1194_v63, 0.0 }
 0x20b   : > { %v1099_v20 = vpop.permute.xlu0 %1098 }
 0x20c   : > { %v1222_v37 = vsel %vm492_vm0, %v1186_v22, 0.0  ;;  %v1196_v36 = vmul.f32 %v1965_v15, %v1099_v20 }
 0x20d   : > { %v1054_v49 = vpop.permute.xlu1 %1053  ;;  %v1223_v43 = vadd.f32 %v1222_v37, %v1221_v50 }
 0x20e   : > { %v1187_v29 = vmul.f32 %v1957_v24, %v1054_v49  ;;  %v1242_v18 = vsel %vm492_vm0, %v1196_v36, 0.0  ;;  %v1969_v24 = vld [vmem:[%s2444_s8 + $0x98] sm:$0xff] }
 0x20f   : > { %v1109_v48 = vpop.permute.xlu0 %1108 }
 0x210   : > { %v1224_v40 = vsel %vm492_vm0, %v1187_v29, 0.0  ;;  %v1198_v35 = vmul.f32 %v1967_v52, %v1109_v48 }
 0x211   : > { %v1059_v39 = vpop.permute.xlu1 %1058  ;;  %v1225_v47 = vadd.f32 %v1224_v40, %v1223_v43  ;;  %v1971_v43 = vld [vmem:[%s2444_s8 + $0xa8] sm:$0xff] }
 0x212   : > { %v1188_v27 = vmul.f32 %v1958_v55, %v1059_v39  ;;  %v1246_v23 = vsel %vm492_vm0, %v1198_v35, 0.0 }
 0x213   : > { %v1119_v14 = vpop.permute.xlu0 %1118 }
 0x214   : > { %v1226_v44 = vsel %vm492_vm0, %v1188_v27, 0.0  ;;  %v1200_v29 = vmul.f32 %v1969_v24, %v1119_v14 }
 0x215   : > { %v1064_v53 = vpop.permute.xlu1 %1063  ;;  %v1227_v0 = vadd.f32 %v1226_v44, %v1225_v47  ;;  %v1972_v47 = vld [vmem:[%s2444_s8 + $0xa0] sm:$0xff] }
 0x216   : > { %v1189_v13 = vmul.f32 %v1960_v54, %v1064_v53  ;;  %v1250_v27 = vsel %vm492_vm0, %v1200_v29, 0.0 }
 0x217   : > { %v1129_v11 = vpop.permute.xlu0 %1128 }
 0x218   : > { %v1228_v30 = vsel %vm492_vm0, %v1189_v13, 0.0  ;;  %v1202_v44 = vmul.f32 %v1971_v43, %v1129_v11 }
 0x219   : > { %v1229_v33 = vadd.f32 %v1228_v30, %v1227_v0  ;;  %v1074_v34 = vpop.permute.xlu1 %1073  ;;  %v1973_v0 = vld [vmem:[%s2444_s8 + $0xb8] sm:$0xff] }
 0x21a   : > { %v1191_v6 = vmul.f32 %v1962_v5, %v1074_v34  ;;  %v1254_v13 = vsel %vm492_vm0, %v1202_v44, 0.0  ;;  %v1010_v44 = vld [vmem:[#allocation4] sm:$0x1] }
 0x21b   : > { %v1231_v58 = vadd.f32 %v1230_v60, %v1229_v33  ;;  %v1139_v19 = vpop.permute.xlu0 %1138  ;;  %v1974_v33 = vld [vmem:[%s2444_s8 + $0xb0] sm:$0xff] }
 0x21c   : > { %v1232_v1 = vsel %vm492_vm0, %v1191_v6, 0.0  ;;  %v1204_v30 = vmul.f32 %v1973_v0, %v1139_v19 }
 0x21d   : > { %v1233_v25 = vadd.f32 %v1232_v1, %v1231_v58  ;;  %v1084_v59 = vpop.permute.xlu1 %1083  ;;  %v1975_v58 = vld [vmem:[%s2444_s8 + $0xc8] sm:$0xff] }
 0x21e   : > { %v1193_v8 = vmul.f32 %v1964_v41, %v1084_v59  ;;  %v1258_v14 = vsel %vm492_vm0, %v1204_v30, 0.0  ;;  %v1306_v30 = vld [vmem:[%s3141_s4] sm:$0x1] }
 0x21f   : > { %v1235_v26 = vadd.f32 %v1234_v38, %v1233_v25  ;;  %v1149_v39 = vpop.permute.xlu0 %1148  ;;  %v1976_v25 = vld [vmem:[%s2444_s8 + $0xc0] sm:$0xff] }
 0x220   : > { %v1236_v3 = vsel %vm492_vm0, %v1193_v8, 0.0  ;;  %v1206_v1 = vmul.f32 %v1975_v58, %v1149_v39  ;;  %v1400_v58 = vld [vmem:[#allocation10] sm:$0xff] }
 0x221   : > { %v1237_v51 = vadd.f32 %v1236_v3, %v1235_v26  ;;  %v1094_v62 = vpop.permute.xlu1 %1093  ;;  %v1977_v3 = vld [vmem:[%s2444_s8 + $0xd8] sm:$0xff]  ;;  %1761 = vmatpush3.msra.mxu1 %v1400_v58 }
 0x222   : > { %v1195_v4 = vmul.f32 %v1966_v42, %v1094_v62  ;;  %v1262_v26 = vsel %vm492_vm0, %v1206_v1, 0.0 }
 0x223   : > { %v1239_v16 = vadd.f32 %v1238_v12, %v1237_v51  ;;  %v1159_v60 = vpop.permute.xlu0 %1158  ;;  %v1978_v51 = vld [vmem:[%s2444_s8 + $0xd0] sm:$0xff] }
 0x224   : > { %v1240_v45 = vsel %vm492_vm0, %v1195_v4, 0.0  ;;  %v1208_v11 = vmul.f32 %v1977_v3, %v1159_v60 }
 0x225   : > { %v1241_v9 = vadd.f32 %v1240_v45, %v1239_v16  ;;  %v1104_v17 = vpop.permute.xlu1 %1103  ;;  %v1979_v16 = vld [vmem:[%s2444_s8 + $0xe8] sm:$0xff] }
 0x226   : > { %v1197_v21 = vmul.f32 %v1968_v10, %v1104_v17  ;;  %v1266_v4 = vsel %vm492_vm0, %v1208_v11, 0.0  ;;  %v1401_v11 = vld [vmem:[#allocation12] sm:$0x1] }
 0x227   : > { %v1243_v46 = vadd.f32 %v1242_v18, %v1241_v9  ;;  %v1169_v63 = vpop.permute.xlu0 %1168  ;;  %v1980_v9 = vld [vmem:[%s2444_s8 + $0xe0] sm:$0xff] }
 0x228   : > { %v1244_v22 = vsel %vm492_vm0, %v1197_v21, 0.0  ;;  %v1210_v45 = vmul.f32 %v1979_v16, %v1169_v63 }
 0x229   : > { %v1245_v57 = vadd.f32 %v1244_v22, %v1243_v46  ;;  %v1114_v49 = vpop.permute.xlu1 %1113  ;;  %v1981_v46 = vld [vmem:[%s2444_s8 + $0xf8] sm:$0xff] }
 0x22a   : > { %v1199_v20 = vmul.f32 %v1970_v31, %v1114_v49  ;;  %v1270_v19 = vsel %vm492_vm0, %v1210_v45, 0.0 }
 0x22b   : > { %v1247_v37 = vadd.f32 %v1246_v23, %v1245_v57  ;;  %v1179_v18 = vpop.permute.xlu0 %1178  ;;  %v1982_v57 = vld [vmem:[%s2444_s8 + $0xf0] sm:$0xff] }
 0x22c   : > { %v1248_v50 = vsel %vm492_vm0, %v1199_v20, 0.0  ;;  %v1212_v22 = vmul.f32 %v1981_v46, %v1179_v18 }
 0x22d   : > { %v1249_v40 = vadd.f32 %v1248_v50, %v1247_v37  ;;  %v1124_v55 = vpop.permute.xlu1 %1123 }
 0x22e   : > { %v1201_v48 = vmul.f32 %v1972_v47, %v1124_v55  ;;  %v1274_v31 = vsel %vm492_vm0, %v1212_v22, 0.0 }
 0x22f   : > { %v1251_v53 = vadd.f32 %v1250_v27, %v1249_v40 }
 0x230   : > { %v1252_v56 = vsel %vm492_vm0, %v1201_v48, 0.0 }
 0x231   : > { %v1253_v28 = vadd.f32 %v1252_v56, %v1251_v53  ;;  %v1134_v54 = vpop.permute.xlu1 %1133 }
 0x232   : > { %v1203_v34 = vmul.f32 %v1974_v33, %v1134_v54 }
 0x233   : > { %v1255_v2 = vadd.f32 %v1254_v13, %v1253_v28 }
 0x234   : > { %v1256_v61 = vsel %vm492_vm0, %v1203_v34, 0.0 }
 0x235   : > { %v1257_v5 = vadd.f32 %v1256_v61, %v1255_v2  ;;  %v1144_v6 = vpop.permute.xlu1 %1143 }
 0x236   : > { %v1205_v59 = vmul.f32 %v1976_v25, %v1144_v6 }
 0x237   : > { %v1259_v38 = vadd.f32 %v1258_v14, %v1257_v5 }
 0x238   : > { %v1260_v7 = vsel %vm492_vm0, %v1205_v59, 0.0 }
 0x239   : > { %v1261_v41 = vadd.f32 %v1260_v7, %v1259_v38  ;;  %v1154_v8 = vpop.permute.xlu1 %1153  ;;  %v1395_v7 = vld [vmem:[%s3142_s5] sm:$0x1] }
 0x23a   : > { %v1207_v62 = vmul.f32 %v1978_v51, %v1154_v8 }
 0x23b   : > { %v1263_v12 = vadd.f32 %v1262_v26, %v1261_v41  ;;  %v1397_v41 = vld [vmem:[%s3143_s6] sm:$0x1] }
 0x23c   : > { %v1264_v15 = vsel %vm492_vm0, %v1207_v62, 0.0 }
 0x23d   : > { %v1265_v36 = vadd.f32 %v1264_v15, %v1263_v12  ;;  %v1164_v42 = vpop.permute.xlu1 %1163 }
 0x23e   : > { %v1209_v17 = vmul.f32 %v1980_v9, %v1164_v42 }
 0x23f   : > { %v1267_v52 = vadd.f32 %v1266_v4, %v1265_v36 }
 0x240   : > { %v1268_v35 = vsel %vm492_vm0, %v1209_v17, 0.0 }
 0x241   : > { %v1269_v10 = vadd.f32 %v1268_v35, %v1267_v52  ;;  %v1174_v21 = vpop.permute.xlu1 %1173 }
 0x242   : > { %v1211_v49 = vmul.f32 %v1982_v57, %v1174_v21 }
 0x243   : > { %v1271_v23 = vadd.f32 %v1270_v19, %v1269_v10 }
 0x244   : > { %v1272_v24 = vsel %vm492_vm0, %v1211_v49, 0.0 }
 0x245   : > { %v1273_v29 = vadd.f32 %v1272_v24, %v1271_v23  ;;  %v1014_v39 = vpop.permute.xlu1 %1013 }
 0x246   : > { %v1019_v43 = vrot.slane %v1014_v39, %v2726_v32 }
 0x247   : > { %v1275_v20 = vadd.f32 %v1274_v31, %v1273_v29 }
 0x248   : > { %v1020_v56 = vmul.f32 %v1019_v43, %v1010_v44 }
 0x249   : > { %v1276_v37 = vrot.slane %v1275_v20, 4 }
 0x24b   : > { %v1277_v50 = vadd.f32 %v1276_v37, %v1275_v20 }
 0x24d   : > { %v1278_v40 = vrot.slane %v1277_v50, 2 }
 0x24e   : > { %v1294_v55 = vpop.permute.xlu0 %1293 }
 0x24f   : > { %v1279_v27 = vadd.f32 %v1278_v40, %v1277_v50  ;;  %v1299_v47 = vrot.slane %v1294_v55, %v2726_v32 }
 0x251   : > { %v1280_v48 = vrot.slane %v1279_v27, 1  ;;  %1947 = vrcp.f32 %v1299_v47 }
 0x253   : > { %v1281_v53 = vadd.f32 %v1280_v48, %v1279_v27 }
 0x255   : > { %v1282_v28 = vadd.f32 %v1281_v53, %v1020_v56 }
 0x257   : > { %1284 = vst.msk [vmem:[#allocation4] sm:$0x1] %vm419_vm3, %v1282_v28 }
 0x25b   : > { %v1948_v54 = vpop.eup %1947 }
 0x25e   : > { %v1289_v13 = vld [vmem:[#allocation4] sm:$0x1] }
 0x25f   : > { %v1301_v0 = vmul.f32 %v1948_v54, %v1289_v13 }
 0x261   : > { %1758 = vmatmul.mubr.msk.f32.vlgmr.msra.gmra.mrb[0].mxu0 %vm492_vm0, %v1301_v0 }
 0x334   : > { %v1376_v33 = vpop.f32.mrb[0].mxu0 }
 0x335   : > { %v1377_v34 = vadd.f32 %v1376_v33, %v1306_v30  ;;  %v1759_v32 = vpop.f32.mrb[1].mxu0 }
 0x337   : > { %v1381_v60 = vsel %vm1380_vm5, %v1377_v34, 0.0 }
 0x338   : > { %1382 = vadd.xlane.f32.xlu1 %v1381_v60 }
 0x3c5   : > { %v1383_v2 = vpop.xlane.xlu1 %1382 }
 0x3c6   : > { %v1385_v61 = vmul.f32 0.125, %v1383_v2 }
 0x3c8   : > { %v1386_v5 = vsub.f32 %v1377_v34, %v1385_v61 }
 0x3ca   : > { %v1387_v6 = vmul.f32 %v1386_v5, %v1386_v5 }
 0x3cc   : > { %v1388_v14 = vsel %vm1380_vm5, %v1387_v6, 0.0 }
 0x3cd   : > { %1389 = vadd.xlane.f32.xlu0 %v1388_v14 }
 0x45a   : > { %v1390_v1 = vpop.xlane.xlu0 %1389 }
 0x45b   : > { %v1391_v25 = vmul.f32 0.125, %v1390_v1 }
 0x45d   : > { %v1392_v59 = vadd.f32 1e-05, %v1391_v25 }
 0x45f   : > { %1949 = vrsqrt.f32 %v1392_v59 }
 0x469   : > { %v1950_v38 = vpop.eup %1949 }
 0x46a   : > { %v1394_v63 = vmul.f32 %v1950_v38, %v1386_v5 }
 0x46c   : > { %v1396_v8 = vmul.f32 %v1395_v7, %v1394_v63 }
 0x46e   : > { %v1398_v26 = vadd.f32 %v1397_v41, %v1396_v8 }
 0x470   : > { %v1399_v3 = vmax.f32 %v1398_v26, 0.0 }
 0x472   : > { %1763 = vmatmul.mubr.msk.f32.vlgmr.msra.gmra.mrb[0].mxu1 %vm1402_vm6, %v1399_v3 }
 0x545   : > { %v1472_v51 = vpop.f32.mrb[0].mxu1 }
 0x546   : > { %v1473_v62 = vadd.f32 %v1472_v51, %v1401_v11  ;;  %v1764_v12 = vpop.f32.mrb[1].mxu1 }
 0x548   : > { %1476 = vst.msk [vmem:[#allocation5] sm:$0x1] %vm419_vm3, %v1473_v62 }
 0x549 PF: > { %p1733_p11 = scmp.ne.s32.totalorder %s2155_s14, 1 }
 0x54a   : > { %v1481_v15 = vld [vmem:[%s2444_s8] sm:$0xff] (!%p1733_p11)  ;;  %vm1552_vm7 = vcmask (!%p1733_p11), 261120   ;;  %v1482_v42 = vld [vmem:[%s2444_s8 + $0x8] sm:$0xff] (!%p1733_p11)  ;;  %v1483_v45 = vld [vmem:[%s2444_s8 + $0x10] sm:$0xff] (!%p1733_p11) }
 0x54b   : > { %1480 = sbr.rel (%p1733_p11) target bundleno = 1378 (0x562), region = 84  ;;  %v1484_v9 = vld [vmem:[%s2444_s8 + $0x18] sm:$0xff] (!%p1733_p11)  ;;  %v1485_v17 = vld [vmem:[%s2444_s8 + $0x20] sm:$0xff] (!%p1733_p11)  ;;  %v1486_v10 = vld [vmem:[%s2444_s8 + $0x28] sm:$0xff] (!%p1733_p11) }
 0x54c   : > { %v1487_v21 = vld [vmem:[%s2444_s8 + $0x30] sm:$0xff] (!%p1733_p11)  ;;  %v1488_v19 = vld [vmem:[%s2444_s8 + $0x38] sm:$0xff] (!%p1733_p11)  ;;  %v1489_v49 = vld [vmem:[%s2444_s8 + $0x40] sm:$0xff] (!%p1733_p11) }
 0x54d   : > { %v1490_v23 = vld [vmem:[%s2444_s8 + $0x48] sm:$0xff] (!%p1733_p11)  ;;  %v1491_v24 = vld [vmem:[%s2444_s8 + $0x50] sm:$0xff] (!%p1733_p11)  ;;  %v1492_v37 = vld [vmem:[%s2444_s8 + $0x58] sm:$0xff] (!%p1733_p11) }
 0x54e   : > { %v1493_v50 = vld [vmem:[%s2444_s8 + $0x60] sm:$0xff] (!%p1733_p11)  ;;  %v1494_v39 = vld [vmem:[%s2444_s8 + $0x68] sm:$0xff] (!%p1733_p11)  ;;  %v1495_v43 = vld [vmem:[%s2444_s8 + $0x70] sm:$0xff] (!%p1733_p11) }
 0x54f   : > { %v2947_v36 = vld [vmem:[#allocation5] ss:$0 sm:$0xff] (!%p1733_p11)  ;;  %v1497_v47 = vld [vmem:[%s2444_s8 + $0x80] sm:$0xff] (!%p1733_p11)  ;;  %v1498_v28 = vld [vmem:[%s2444_s8 + $0x88] sm:$0xff] (!%p1733_p11) }
 0x550   : > { %v1520_v4 = vadd.f32 (!%p1733_p11), %v2947_v36, %v1481_v15  ;;  %v1521_v16 = vadd.f32 (!%p1733_p11), %v2947_v36, %v1482_v42  ;;  %v1522_v18 = vadd.f32 (!%p1733_p11), %v2947_v36, %v1483_v45  ;;  %v1523_v52 = vadd.f32 (!%p1733_p11), %v2947_v36, %v1484_v9  ;;  %v1496_v44 = vld [vmem:[%s2444_s8 + $0x78] sm:$0xff] (!%p1733_p11)  ;;  %v1499_v54 = vld [vmem:[%s2444_s8 + $0x90] sm:$0xff] (!%p1733_p11)  ;;  %v1501_v34 = vld [vmem:[%s2444_s8 + $0xa0] sm:$0xff] (!%p1733_p11) }
 0x551   : > { %v1524_v35 = vadd.f32 (!%p1733_p11), %v2947_v36, %v1485_v17  ;;  %v1525_v46 = vadd.f32 (!%p1733_p11), %v2947_v36, %v1486_v10  ;;  %v1526_v22 = vadd.f32 (!%p1733_p11), %v2947_v36, %v1487_v21  ;;  %v1527_v57 = vadd.f32 (!%p1733_p11), %v2947_v36, %v1488_v19  ;;  %v1500_v13 = vld [vmem:[%s2444_s8 + $0x98] sm:$0xff] (!%p1733_p11)  ;;  %v1502_v32 = vld [vmem:[%s2444_s8 + $0xa8] sm:$0xff] (!%p1733_p11)  ;;  %v1503_v60 = vld [vmem:[%s2444_s8 + $0xb0] sm:$0xff] (!%p1733_p11) }
 0x552   : > { %1553 = vst.msk [vmem:[%s2454_s7] sm:$0xff] %vm1552_vm7, %v1520_v4  ;;  %1554 = vst.msk [vmem:[%s2454_s7 + $0x8] sm:$0xff] %vm1552_vm7, %v1521_v16  ;;  %v1528_v29 = vadd.f32 %v2947_v36, %v1489_v49  ;;  %v1529_v31 = vadd.f32 %v2947_v36, %v1490_v23  ;;  %v1530_v20 = vadd.f32 %v2947_v36, %v1491_v24  ;;  %v1504_v6 = vld [vmem:[%s2444_s8 + $0xb8] sm:$0xff]  ;;  %v1505_v14 = vld [vmem:[%s2444_s8 + $0xc0] sm:$0xff] }
 0x553   : > { %1555 = vst.msk [vmem:[%s2454_s7 + $0x10] sm:$0xff] %vm1552_vm7, %v1522_v18  ;;  %1556 = vst.msk [vmem:[%s2454_s7 + $0x18] sm:$0xff] %vm1552_vm7, %v1523_v52  ;;  %v1531_v40 = vadd.f32 %v2947_v36, %v1492_v37  ;;  %v1532_v55 = vadd.f32 %v2947_v36, %v1493_v50  ;;  %v1533_v27 = vadd.f32 %v2947_v36, %v1494_v39  ;;  %v1506_v58 = vld [vmem:[%s2444_s8 + $0xc8] sm:$0xff]  ;;  %v1507_v38 = vld [vmem:[%s2444_s8 + $0xd0] sm:$0xff] }
 0x554   : > { %1557 = vst.msk [vmem:[%s2454_s7 + $0x20] sm:$0xff] %vm1552_vm7, %v1524_v35  ;;  %1558 = vst.msk [vmem:[%s2454_s7 + $0x28] sm:$0xff] %vm1552_vm7, %v1525_v46  ;;  %v1534_v48 = vadd.f32 %v2947_v36, %v1495_v43  ;;  %v1535_v53 = vadd.f32 %v2947_v36, %v1496_v44  ;;  %v1536_v56 = vadd.f32 %v2947_v36, %v1497_v47  ;;  %v1508_v7 = vld [vmem:[%s2444_s8 + $0xd8] sm:$0xff]  ;;  %v1509_v63 = vld [vmem:[%s2444_s8 + $0xe0] sm:$0xff] }
 0x555   : > { %1559 = vst.msk [vmem:[%s2454_s7 + $0x30] sm:$0xff] %vm1552_vm7, %v1526_v22  ;;  %1560 = vst.msk [vmem:[%s2454_s7 + $0x38] sm:$0xff] %vm1552_vm7, %v1527_v57  ;;  %v1537_v0 = vadd.f32 %v2947_v36, %v1498_v28  ;;  %v1538_v30 = vadd.f32 %v2947_v36, %v1499_v54  ;;  %v1539_v33 = vadd.f32 %v2947_v36, %v1500_v13  ;;  %v1510_v3 = vld [vmem:[%s2444_s8 + $0xe8] sm:$0xff]  ;;  %v1511_v11 = vld [vmem:[%s2444_s8 + $0xf0] sm:$0xff] }
 0x556   : > { %1561 = vst.msk [vmem:[%s2454_s7 + $0x40] sm:$0xff] %vm1552_vm7, %v1528_v29  ;;  %1562 = vst.msk [vmem:[%s2454_s7 + $0x48] sm:$0xff] %vm1552_vm7, %v1529_v31  ;;  %v1540_v2 = vadd.f32 %v2947_v36, %v1501_v34  ;;  %v1541_v61 = vadd.f32 %v2947_v36, %v1502_v32  ;;  %v1542_v5 = vadd.f32 %v2947_v36, %v1503_v60  ;;  %v1512_v51 = vld [vmem:[%s2444_s8 + $0xf8] sm:$0xff] }
 0x557   : > { %1563 = vst.msk [vmem:[%s2454_s7 + $0x50] sm:$0xff] %vm1552_vm7, %v1530_v20  ;;  %1564 = vst.msk [vmem:[%s2454_s7 + $0x58] sm:$0xff] %vm1552_vm7, %v1531_v40  ;;  %v1543_v1 = vadd.f32 %v2947_v36, %v1504_v6  ;;  %v1544_v25 = vadd.f32 %v2947_v36, %v1505_v14  ;;  %v1545_v59 = vadd.f32 %v2947_v36, %v1506_v58 }
 0x558   : > { %1565 = vst.msk [vmem:[%s2454_s7 + $0x60] sm:$0xff] %vm1552_vm7, %v1532_v55  ;;  %1566 = vst.msk [vmem:[%s2454_s7 + $0x68] sm:$0xff] %vm1552_vm7, %v1533_v27  ;;  %v1546_v41 = vadd.f32 %v2947_v36, %v1507_v38  ;;  %v1547_v8 = vadd.f32 %v2947_v36, %v1508_v7  ;;  %v1548_v26 = vadd.f32 %v2947_v36, %v1509_v63 }
 0x559   : > { %1567 = vst.msk [vmem:[%s2454_s7 + $0x70] sm:$0xff] %vm1552_vm7, %v1534_v48  ;;  %1568 = vst.msk [vmem:[%s2454_s7 + $0x78] sm:$0xff] %vm1552_vm7, %v1535_v53  ;;  %v1549_v62 = vadd.f32 %v2947_v36, %v1510_v3  ;;  %v1550_v12 = vadd.f32 %v2947_v36, %v1511_v11  ;;  %v1551_v15 = vadd.f32 %v2947_v36, %v1512_v51 }
 0x55a   : > { %1569 = vst.msk [vmem:[%s2454_s7 + $0x80] sm:$0xff] %vm1552_vm7, %v1536_v56  ;;  %1570 = vst.msk [vmem:[%s2454_s7 + $0x88] sm:$0xff] %vm1552_vm7, %v1537_v0 }
 0x55b   : > { %1571 = vst.msk [vmem:[%s2454_s7 + $0x90] sm:$0xff] %vm1552_vm7, %v1538_v30  ;;  %1572 = vst.msk [vmem:[%s2454_s7 + $0x98] sm:$0xff] %vm1552_vm7, %v1539_v33 }
 0x55c   : > { %1573 = vst.msk [vmem:[%s2454_s7 + $0xa0] sm:$0xff] %vm1552_vm7, %v1540_v2  ;;  %1574 = vst.msk [vmem:[%s2454_s7 + $0xa8] sm:$0xff] %vm1552_vm7, %v1541_v61 }
 0x55d   : > { %1575 = vst.msk [vmem:[%s2454_s7 + $0xb0] sm:$0xff] %vm1552_vm7, %v1542_v5  ;;  %1576 = vst.msk [vmem:[%s2454_s7 + $0xb8] sm:$0xff] %vm1552_vm7, %v1543_v1 }
 0x55e   : > { %1577 = vst.msk [vmem:[%s2454_s7 + $0xc0] sm:$0xff] %vm1552_vm7, %v1544_v25  ;;  %1578 = vst.msk [vmem:[%s2454_s7 + $0xc8] sm:$0xff] %vm1552_vm7, %v1545_v59 }
 0x55f   : > { %1579 = vst.msk [vmem:[%s2454_s7 + $0xd0] sm:$0xff] %vm1552_vm7, %v1546_v41  ;;  %1580 = vst.msk [vmem:[%s2454_s7 + $0xd8] sm:$0xff] %vm1552_vm7, %v1547_v8 }
 0x560   : > { %1581 = vst.msk [vmem:[%s2454_s7 + $0xe0] sm:$0xff] %vm1552_vm7, %v1548_v26  ;;  %1582 = vst.msk [vmem:[%s2454_s7 + $0xe8] sm:$0xff] %vm1552_vm7, %v1549_v62 }
 0x561   : > { %1583 = vst.msk [vmem:[%s2454_s7 + $0xf0] sm:$0xff] %vm1552_vm7, %v1550_v12  ;;  %1584 = vst.msk [vmem:[%s2454_s7 + $0xf8] sm:$0xff] %vm1552_vm7, %v1551_v15 }
 0x562 PF: > { %s1741_s14 = sshll.u32 %s2159_s15, 12  ;;  %s3180_s24 = sld [smem:[#allocation22_spill]] }
 0x563   : > { %s1602_s9 = sshll.u32 %s2454_s7, 4  ;;  %s1586_s10 = scalar_lea.sflag [#allocation9], %s2440_s26  ;;  %s3083_s9 = int_to_ptr.vmem [resolvable:$true] %s1602_s9 }
 0x564   : > { %s2069_s2 = scalar_lea.vmem %s3083_s9, 4096  ;;  %p3181_p0 = scmp.ne.s32.totalorder %s3166_s23, 0 }
 0x565   : > { %p2070_p13 = scmp.ne.s32.totalorder %s3083_s9, %s2069_s2  ;;  %s2183_s18 = smov [#allocation13]  }
 0x566   : > { %s2073_s21 = sshll.u32 %s2183_s18, 4  ;;  %s2074_s21 = int_to_ptr.vmem [resolvable:$false] %s2073_s21 }
 0x567   : > { %p2071_p5 = pnand %p2070_p13, %p3181_p0  ;;  %s2075_s15 = scalar_lea.vmem %s2074_s21, 8192 }
 0x568   : > { %s3080_s29 = scalar_lea.hbm %s3180_s24, %s1741_s14  ;;  %p2076_p3 = scmp.lt.s32.totalorder %s3083_s9, %s2074_s21 }
 0x569   : > { %p2072_p9 = pneg %p2071_p5  ;;  %p2077_p12 = scmp.lt.s32.totalorder %s2075_s15, %s2069_s2 }
 0x56b   : > { %p2078_p4 = por %p2077_p12, %p2076_p3 }
 0x56d   : > { %p2079_p6 = pnand %p2078_p4, %p2072_p9 }
 0x56f   : > { %2082 = shalt.err (!%p2079_p6)
}
 0x570   : > { %s2083_s7 = scalar_lea.hbm %s3080_s29, 4096  ;;  %s2087_s20 = scalar_lea.hbm %s3180_s24, 8192 }
 0x571   : > { %p2084_p10 = scmp.ne.s32.totalorder %s3080_s29, %s2083_s7  ;;  %p2088_p2 = scmp.lt.u32.totalorder %s3080_s29, %s3180_s24 }
 0x572   : > { %p2089_p7 = scmp.lt.u32.totalorder %s2087_s20, %s2083_s7  ;;  %p2091_p13 = scmp.lt.u32.totalorder %s2083_s7, %s3080_s29 }
 0x573   : > { %p2085_p8 = pnand %p2084_p10, %p3181_p0 }
 0x574   : > { %p2090_p11 = por %p2089_p7, %p2088_p2 }
 0x575   : > { %p2086_p1 = pneg %p2085_p8 }
 0x576   : > { %p2092_p5 = por %p2091_p13, %p2090_p11 }
 0x578   : > { %p2093_p9 = pnand %p2092_p5, %p2086_p1 }
 0x57a   : > { %2096 = shalt.err (!%p2093_p9)
}
 0x57b   : > { %s2184_s8 = smov 128   ;;  %s2185_s27 = smov 8  }
 0x57c   : > { %1781 = dma.vmem_to_hbm [thread:$0]  (%p3181_p0), %s3083_s9, 4096, %s3080_s29, %s1586_s10, %s2184_s8, %s2184_s8, %s2185_s27  }
 0x57d PF: > { %s3182_s2 = sld [smem:[#allocation18_spill]]  ;;  %s3183_s18 = sld [smem:[#allocation17_spill]] }
 0x57e   : > { %s3184_s21 = sld [smem:[#allocation19_spill]] }
 0x583   : > { %p1803_p3 = scmp.ge.s32.totalorder %s3182_s2, 2  ;;  %s1617_s15 = sand.u32 1, %s3183_s18  }
 0x584   : > { %p3185_p12 = scmp.ne.s32.totalorder %s3184_s21, 0  ;;  %s1618_s7 = scalar_lea.sflag [#allocation9], %s1617_s15 }
 0x586   : > { %p1795_p4 = pnand %p1803_p3, %p3185_p12 }
 0x588   : > { %2138 = dma.done.wait (!%p1795_p4), %s1618_s7, 4096  }
 0x589   : > { %2140 = vsyncadd (!%p1795_p4), %s1618_s7, 4294963200  ;;  %s28_s2 = sadd.s32 1, %s3182_s2   ;;  %s3186_s23 = smov %s3195_s11 }
 0x58a   : > { %p25_p6 = scmp.ge.s32.totalorder %s28_s2, 6   ;;  %s3187_s11 = smov %s2147_s12 }
 0x58b   : > { %s3188_s12 = smov %s2151_s13  ;;  %s3189_s13 = smov %s2435_s30 }
 0x58c   : > { %s3190_s14 = smov %s2163_s16  ;;  %s3191_s15 = smov %s2167_s17 }
 0x58d   : > { %s3192_s16 = smov %s3186_s23  ;;  %s3193_s17 = smov %s3199_s19 }
 0x58e   :  { %27 = sbr.rel (!%p25_p6) target bundleno = 12 (0xc), region = 125 }
 0x595   :  { %1623 = vsyncpa [#allocation8], 1 }
 0x596   :  { %1625 = vsyncpa [#allocation8 + $0x1], 1 }
 0x597   :  { %1626 = vsyncpa [#allocation11], 1 }
 0x598   :  { %1627 = vsyncpa [#allocation9], 1 }
 0x599   :  { %1629 = vsyncpa [#allocation9 + $0x1], 1 }

</bundles_post_ra>
